<compile_context>
chip_gen: v6e
topology: v6e:2x2x1
jax: 0.10.0
libtpu: 0.0.40
codegen_flags: <defaults>
</compile_context>

<pallas_src>
import functools

import jax
import jax.numpy as jnp
from jax import lax
from jax.experimental import pallas as pl
from jax.experimental.pallas import tpu as pltpu

VMEM_SPEC = pl.BlockSpec(memory_space=pltpu.MemorySpace.VMEM)
_NEG_INF = -1e30


def _mxu_dot(a, b):
    """bf16 MXU matmul with f32 accumulation."""
    return jnp.dot(a.astype(jnp.bfloat16), b.astype(jnp.bfloat16),
                   preferred_element_type=jnp.float32)


def _softmax_chain_dtype():
    """bf16 N^2 softmax chain on v6e/v7x (bf16 VPU/EUP); f32 on v5e and older."""
    try:
        kind = jax.devices()[0].device_kind.lower()
    except Exception:
        return jnp.float32
    if any(tag in kind for tag in ("v6", "v7", "7x")):
        return jnp.bfloat16
    return jnp.float32


def _vmem_limit_bytes():
    """Generation-aware scoped-VMEM cap (don't hard-code 32 MiB)."""
    try:
        cap = int(pltpu.get_tpu_info().vmem_capacity_bytes)
    except Exception:
        cap = 64 * 1024 * 1024          # conservative (v7x-sized) fallback
    return max(32 * 1024 * 1024, min(int(0.85 * cap), 100 * 1024 * 1024))


# ---------------------------------------------------------------------------
# Fused forward kernel: everything VMEM-resident, single block, no grid.
# ---------------------------------------------------------------------------
def _fused_forward_kernel(*refs, num_convs, chain_dtype):
    it = iter(refs)
    x_ref, adj_ref = next(it), next(it)
    conv_w = [next(it) for _ in range(num_convs)]   # bf16 [Fin, Fout] weights
    vec_ref = next(it)                              # packed [R, 128] f32 small params
    tran_w, l0_w, l1_w = next(it), next(it), next(it)
    out_ref = next(it)

    def vec(row, width):                            # static slice -> [1, width]
        return vec_ref[row:row + 1, :width]

    # Additive attention mask, built once (adjacency only compared against 0).
    adjf = adj_ref[...].astype(jnp.float32)         # int8 -> f32
    mask_bias = jnp.where(adjf > 0, 0.0, _NEG_INF).astype(chain_dtype)   # [N, N]

    x = x_ref[...]                                  # [N, Fin] f32
    for li in range(num_convs):
        f_out = conv_w[li].shape[1]
        att_src = vec(2 * li, f_out)                # [1, Fout] f32
        att_dst = vec(2 * li + 1, f_out)            # [1, Fout] f32

        # h = x @ W  (MXU, bf16 in / f32 acc); bf16 copy reused twice below.
        h = _mxu_dot(x, conv_w[li][...])            # [N, Fout] f32
        h_bf = h.astype(jnp.bfloat16)

        # attention scores: e[i, j] = LeakyReLU_0.2(a_dst[i] + a_src[j])
        a_dst = jnp.sum(h * att_dst, axis=-1, keepdims=True)        # [N,1] VPU+XLU, f32
        a_src = lax.dot_general(                                     # [1,N] lane-dense, bf16 MXU
            att_src.astype(jnp.bfloat16), h_bf,
            dimension_numbers=(((1,), (1,)), ((), ())),
            preferred_element_type=jnp.float32)

        # N^2 chain in chain_dtype (bf16 on v6e/v7x, f32 on v5e).
        e = a_dst.astype(chain_dtype) + a_src.astype(chain_dtype)    # [N, N]
        e = jnp.maximum(e, 0.2 * e)                                  # LeakyReLU(0.2)
        e = e + mask_bias                                            # masked -> -1e30
        e = e - jnp.max(e, axis=-1, keepdims=True)
        p = jnp.exp(e)                               # masked entries underflow to 0

        denom = jnp.sum(p, axis=-1, keepdims=True).astype(jnp.float32)
        denom = jnp.maximum(denom, 1e-30)            # zero-in-degree guard
        # normalize AFTER aggregation: O(N*Fout) scale instead of O(N^2) multiply
        agg = jnp.dot(p.astype(jnp.bfloat16), h_bf,
                      preferred_element_type=jnp.float32)            # [N, Fout]
        h = agg * pl.reciprocal(denom, approx=True)                  # EUP slot

        if li == num_convs - 1:                      # tran_lin fused on the last conv
            bn_c = tran_w.shape[1]
            h = _mxu_dot(h, tran_w[...]) + vec(4 * num_convs, bn_c)  # conv bias pre-folded
        else:
            bn_c = f_out
        # folded eval-mode BatchNorm1d (+ conv bias) + ReLU; dropout = identity
        scale = vec(2 * num_convs + 2 * li, bn_c)
        shift = vec(2 * num_convs + 2 * li + 1, bn_c)
        x = jnp.maximum(h * scale + shift, 0.0)

    # MLP head: lins[0] + ReLU (+ eval-mode dropout = id), then lins[1]
    x = jnp.maximum(_mxu_dot(x, l0_w[...]) + vec(4 * num_convs + 1, l0_w.shape[1]), 0.0)
    out_ref[...] = _mxu_dot(x, l1_w[...]) + vec(4 * num_convs + 2, l1_w.shape[1])


# ---------------------------------------------------------------------------
# Wrapper: fold BN + conv bias, pack small params, single pallas_call.
# ---------------------------------------------------------------------------
def dummy_fair_gat_forward(x, adj_t, params):
    num_convs = len(params["convs"])
    n = x.shape[0]
    out_ch = params["lins"][1]["w_t"].shape[1]
    eps = 1e-5
    chain_dtype = _softmax_chain_dtype()

    # --- bf16 weight matrices (MXU operands) -------------------------------
    convs_w = [c["w_t"].astype(jnp.bfloat16) for c in params["convs"]]
    tran_w = params["tran_lin"]["w_t"].astype(jnp.bfloat16)
    l0_w = params["lins"][0]["w_t"].astype(jnp.bfloat16)
    l1_w = params["lins"][1]["w_t"].astype(jnp.bfloat16)

    # --- fold eval-mode BN and conv bias; collect tiny [1,C] rows -----------
    small_rows = []
    for conv in params["convs"]:
        small_rows += [conv["att_src"], conv["att_dst"]]          # rows 0 .. 2L-1
    tran_b = params["tran_lin"]["b"]
    for li, (conv, bn) in enumerate(zip(params["convs"], params["bns"])):
        scale = bn["gamma"] * lax.rsqrt(bn["var"] + eps)
        shift = bn["beta"] - bn["mean"] * scale
        if li == num_convs - 1:
            # last conv bias feeds tran_lin -> fold into tran_lin bias
            tran_b = conv["bias"] @ params["tran_lin"]["w_t"] + tran_b
        else:
            shift = shift + conv["bias"] * scale
        small_rows += [scale, shift]                              # rows 2L .. 4L-1
    small_rows += [tran_b, params["lins"][0]["b"], params["lins"][1]["b"]]   # 4L, 4L+1, 4L+2

    pack_w = max(128, ((max(r.shape[1] for r in small_rows) + 127) // 128) * 128)
    packed = jnp.concatenate(
        [jnp.pad(r.astype(jnp.float32), ((0, 0), (0, pack_w - r.shape[1])))
         for r in small_rows], axis=0)                            # [R, pack_w] f32

    # Adjacency as int8 (only ever compared against 0 in-kernel).
    adj_i8 = (adj_t != 0).astype(jnp.int8)

    flat = [x.astype(jnp.float32), adj_i8] + convs_w + [packed, tran_w, l0_w, l1_w]

    # Rough advisory cost estimate for XLA scheduling.
    flops, transcendentals = 0, 0
    for conv in params["convs"]:
        f_in, f_out = conv["w_t"].shape
        flops += 2 * n * f_in * f_out           # x @ W
        flops += 4 * n * f_out + 2 * n * f_out  # score reduces / a_src
        flops += 2 * n * n * f_out              # p @ h
        flops += 7 * n * n                      # score build / mask / softmax chain
        transcendentals += n * n + n            # exp + reciprocal
    ti, to = params["tran_lin"]["w_t"].shape
    flops += 2 * n * ti * to
    for lin in params["lins"]:
        fi, fo = lin["w_t"].shape
        flops += 2 * n * fi * fo
    bytes_accessed = sum(int(a.size) * a.dtype.itemsize for a in flat) + n * out_ch * 4

    return pl.pallas_call(
        functools.partial(_fused_forward_kernel, num_convs=num_convs,
                          chain_dtype=chain_dtype),
        out_shape=jax.ShapeDtypeStruct((n, out_ch), jnp.float32),
        in_specs=[VMEM_SPEC] * len(flat),
        out_specs=VMEM_SPEC,
        compiler_params=pltpu.CompilerParams(vmem_limit_bytes=_vmem_limit_bytes()),
        cost_estimate=pl.CostEstimate(flops=int(flops),
                                      transcendentals=int(transcendentals),
                                      bytes_accessed=int(bytes_accessed)),
    )(*flat)


# ---------------------------------------------------------------------------
# Deterministic synthetic parameter construction (matches __init__ shapes)
# ---------------------------------------------------------------------------
def init_params(key, in_channels, hidden_channels, out_channels,
                embedding_channels, num_layers, heads=1):
    assert heads == 1, "kernel implements the single-head (heads=1) default"
    ks = iter(jax.random.split(key, 64))

    def dense(k, shape, scale=0.2):
        return (scale * jax.random.normal(k, shape)).astype(jnp.float32)

    def gat_params(f_in, f_out):
        return dict(
            w_t=dense(next(ks), (f_in, f_out)),          # lin weight (transposed)
            att_src=dense(next(ks), (1, f_out)),
            att_dst=dense(next(ks), (1, f_out)),
            bias=dense(next(ks), (1, f_out), scale=0.05),
        )

    def bn_params(c):
        return dict(
            gamma=1.0 + dense(next(ks), (1, c), scale=0.1),
            beta=dense(next(ks), (1, c), scale=0.1),
            mean=dense(next(ks), (1, c), scale=0.1),
            var=1.0 + 0.1 * jax.random.uniform(next(ks), (1, c), dtype=jnp.float32),
        )

    def lin_params(f_in, f_out):
        return dict(w_t=dense(next(ks), (f_in, f_out)),
                    b=dense(next(ks), (1, f_out), scale=0.05))

    hc = heads * hidden_channels
    convs = [gat_params(in_channels, hc)]
    bns = [bn_params(hc)]
    for _ in range(num_layers - 2):
        convs.append(gat_params(hc, hc))
        bns.append(bn_params(hc))
    convs.append(gat_params(hc, hc))
    bns.append(bn_params(hc + embedding_channels))
    return dict(
        convs=convs,
        bns=bns,
        tran_lin=lin_params(hc, hc + embedding_channels),
        lins=[lin_params(hc + embedding_channels, hidden_channels),
              lin_params(hidden_channels, out_channels)],
    )


# ---------------------------------------------------------------------------
if __name__ == "__main__":
    N = 64                      # nodes
    IN_CH, HID_CH, OUT_CH = 16, 32, 8
    EMB_CH, NUM_LAYERS, HEADS = 16, 3, 1

    root = jax.random.PRNGKey(0)
    k_x, k_adj, k_par = jax.random.split(root, 3)

    x = jax.random.normal(k_x, (N, IN_CH), dtype=jnp.float32)
    # Random directed graph (adj_t[i, j] = edge j -> i) plus self-loops
    # (GATConv default add_self_loops=True guarantees nonzero in-degree).
    adj_t = jax.random.bernoulli(k_adj, p=0.1, shape=(N, N)).astype(jnp.float32)
    adj_t = jnp.maximum(adj_t, jnp.eye(N, dtype=jnp.float32))

    params = init_params(k_par, IN_CH, HID_CH, OUT_CH, EMB_CH, NUM_LAYERS, HEADS)

    fwd = jax.jit(dummy_fair_gat_forward)
    out = fwd(x, adj_t, params)
    out = jax.block_until_ready(out)

    assert out.shape == (N, OUT_CH), out.shape
    assert bool(jnp.all(jnp.isfinite(out)))
    print("KERNEL_OK")
</pallas_src>

<mosaic_0001>
module attributes {stable_mosaic.version = 11 : i64} {
  func.func @_fused_forward_kernel(%arg0: memref<64x16xf32, #tpu.memory_space<vmem>>, %arg1: memref<64x64xi8, #tpu.memory_space<vmem>>, %arg2: memref<16x32xbf16, #tpu.memory_space<vmem>>, %arg3: memref<32x32xbf16, #tpu.memory_space<vmem>>, %arg4: memref<32x32xbf16, #tpu.memory_space<vmem>>, %arg5: memref<15x128xf32, #tpu.memory_space<vmem>>, %arg6: memref<32x48xbf16, #tpu.memory_space<vmem>>, %arg7: memref<48x32xbf16, #tpu.memory_space<vmem>>, %arg8: memref<32x8xbf16, #tpu.memory_space<vmem>>, %arg9: memref<64x8xf32, #tpu.memory_space<vmem>>) attributes {dimension_semantics = [], scalar_prefetch = 0 : i64, scratch_operands = 0 : i64, tpu.core_type = #tpu.core_type<tc>} {
    %c0 = arith.constant 0 : index
    %c0_0 = arith.constant 0 : index
    %0 = vector.load %arg1[%c0, %c0_0] : memref<64x64xi8, #tpu.memory_space<vmem>>, vector<64x64xi8>
    %1 = arith.sitofp %0 : vector<64x64xi8> to vector<64x64xf32>
    %cst = arith.constant 0.000000e+00 : f32
    %2 = vector.broadcast %cst : f32 to vector<64x64xf32>
    %3 = arith.cmpf ogt, %1, %2 : vector<64x64xf32>
    %cst_1 = arith.constant 0.000000e+00 : f32
    %cst_2 = arith.constant -1.000000e+30 : f32
    %4 = vector.broadcast %cst_1 : f32 to vector<64x64xf32>
    %5 = vector.broadcast %cst_2 : f32 to vector<64x64xf32>
    %6 = arith.select %3, %4, %5 : vector<64x64xi1>, vector<64x64xf32>
    %c0_3 = arith.constant 0 : index
    %c0_4 = arith.constant 0 : index
    %7 = vector.load %arg0[%c0_3, %c0_4] : memref<64x16xf32, #tpu.memory_space<vmem>>, vector<64x16xf32>
    %c0_5 = arith.constant 0 : index
    %c0_6 = arith.constant 0 : index
    %8 = vector.load %arg5[%c0_5, %c0_6] : memref<15x128xf32, #tpu.memory_space<vmem>>, vector<1x32xf32>
    %c1 = arith.constant 1 : index
    %c0_7 = arith.constant 0 : index
    %9 = vector.load %arg5[%c1, %c0_7] : memref<15x128xf32, #tpu.memory_space<vmem>>, vector<1x32xf32>
    %c0_8 = arith.constant 0 : index
    %c0_9 = arith.constant 0 : index
    %10 = vector.load %arg2[%c0_8, %c0_9] : memref<16x32xbf16, #tpu.memory_space<vmem>>, vector<16x32xbf16>
    %11 = arith.truncf %7 : vector<64x16xf32> to vector<64x16xbf16>
    %cst_10 = arith.constant dense<0.000000e+00> : vector<64x32xf32>
    %12 = tpu.matmul %11, %10, %cst_10 {dimension_numbers = #tpu.dot_dimension_numbers<[1], [0], [0], [1], [0, 0, 1, 1], [], []>} : vector<64x16xbf16>, vector<16x32xbf16>, vector<64x32xf32> -> vector<64x32xf32>
    %13 = arith.truncf %12 : vector<64x32xf32> to vector<64x32xbf16>
    %14 = vector.broadcast %9 : vector<1x32xf32> to vector<64x32xf32>
    %15 = arith.mulf %12, %14 : vector<64x32xf32>
    %cst_11 = arith.constant dense<0.000000e+00> : vector<64xf32>
    %16 = vector.multi_reduction <add>, %15, %cst_11 [1] : vector<64x32xf32> to vector<64xf32>
    %17 = vector.shape_cast %16 : vector<64xf32> to vector<64x1xf32>
    %18 = arith.truncf %8 : vector<1x32xf32> to vector<1x32xbf16>
    %cst_12 = arith.constant dense<0.000000e+00> : vector<1x64xf32>
    %19 = tpu.matmul %18, %13, %cst_12 {dimension_numbers = #tpu.dot_dimension_numbers<[1], [1], [0], [0], [0, 0, 1, 0], [], []>} : vector<1x32xbf16>, vector<64x32xbf16>, vector<1x64xf32> -> vector<1x64xf32>
    %20 = vector.broadcast %17 : vector<64x1xf32> to vector<64x64xf32>
    %21 = vector.broadcast %19 : vector<1x64xf32> to vector<64x64xf32>
    %22 = arith.addf %20, %21 : vector<64x64xf32>
    %cst_13 = arith.constant 2.000000e-01 : f32
    %23 = vector.broadcast %cst_13 : f32 to vector<64x64xf32>
    %24 = arith.mulf %23, %22 : vector<64x64xf32>
    %25 = arith.maximumf %22, %24 : vector<64x64xf32>
    %26 = arith.addf %25, %6 : vector<64x64xf32>
    %cst_14 = arith.constant dense<0xFF800000> : vector<64xf32>
    %27 = vector.multi_reduction <maximumf>, %26, %cst_14 [1] : vector<64x64xf32> to vector<64xf32>
    %28 = vector.shape_cast %27 : vector<64xf32> to vector<64x1xf32>
    %29 = vector.broadcast %28 : vector<64x1xf32> to vector<64x64xf32>
    %30 = arith.subf %26, %29 : vector<64x64xf32>
    %31 = math.exp %30 : vector<64x64xf32>
    %cst_15 = arith.constant dense<0.000000e+00> : vector<64xf32>
    %32 = vector.multi_reduction <add>, %31, %cst_15 [1] : vector<64x64xf32> to vector<64xf32>
    %33 = vector.shape_cast %32 : vector<64xf32> to vector<64x1xf32>
    %cst_16 = arith.constant 1.000000e-30 : f32
    %34 = vector.broadcast %cst_16 : f32 to vector<64x1xf32>
    %35 = arith.maximumf %33, %34 : vector<64x1xf32>
    %36 = arith.truncf %31 : vector<64x64xf32> to vector<64x64xbf16>
    %cst_17 = arith.constant dense<0.000000e+00> : vector<64x32xf32>
    %37 = tpu.matmul %36, %13, %cst_17 {dimension_numbers = #tpu.dot_dimension_numbers<[1], [0], [0], [1], [0, 0, 1, 1], [], []>} : vector<64x64xbf16>, vector<64x32xbf16>, vector<64x32xf32> -> vector<64x32xf32>
    %38 = tpu.reciprocal %35 {approx = true} : vector<64x1xf32> -> vector<64x1xf32>
    %39 = vector.broadcast %38 : vector<64x1xf32> to vector<64x32xf32>
    %40 = arith.mulf %37, %39 : vector<64x32xf32>
    %c6 = arith.constant 6 : index
    %c0_18 = arith.constant 0 : index
    %41 = vector.load %arg5[%c6, %c0_18] : memref<15x128xf32, #tpu.memory_space<vmem>>, vector<1x32xf32>
    %c7 = arith.constant 7 : index
    %c0_19 = arith.constant 0 : index
    %42 = vector.load %arg5[%c7, %c0_19] : memref<15x128xf32, #tpu.memory_space<vmem>>, vector<1x32xf32>
    %43 = vector.broadcast %41 : vector<1x32xf32> to vector<64x32xf32>
    %44 = arith.mulf %40, %43 : vector<64x32xf32>
    %45 = vector.broadcast %42 : vector<1x32xf32> to vector<64x32xf32>
    %46 = arith.addf %44, %45 : vector<64x32xf32>
    %cst_20 = arith.constant 0.000000e+00 : f32
    %47 = vector.broadcast %cst_20 : f32 to vector<64x32xf32>
    %48 = arith.maximumf %46, %47 : vector<64x32xf32>
    %c2 = arith.constant 2 : index
    %c0_21 = arith.constant 0 : index
    %49 = vector.load %arg5[%c2, %c0_21] : memref<15x128xf32, #tpu.memory_space<vmem>>, vector<1x32xf32>
    %c3 = arith.constant 3 : index
    %c0_22 = arith.constant 0 : index
    %50 = vector.load %arg5[%c3, %c0_22] : memref<15x128xf32, #tpu.memory_space<vmem>>, vector<1x32xf32>
    %c0_23 = arith.constant 0 : index
    %c0_24 = arith.constant 0 : index
    %51 = vector.load %arg3[%c0_23, %c0_24] : memref<32x32xbf16, #tpu.memory_space<vmem>>, vector<32x32xbf16>
    %52 = arith.truncf %48 : vector<64x32xf32> to vector<64x32xbf16>
    %cst_25 = arith.constant dense<0.000000e+00> : vector<64x32xf32>
    %53 = tpu.matmul %52, %51, %cst_25 {dimension_numbers = #tpu.dot_dimension_numbers<[1], [0], [0], [1], [0, 0, 1, 1], [], []>} : vector<64x32xbf16>, vector<32x32xbf16>, vector<64x32xf32> -> vector<64x32xf32>
    %54 = arith.truncf %53 : vector<64x32xf32> to vector<64x32xbf16>
    %55 = vector.broadcast %50 : vector<1x32xf32> to vector<64x32xf32>
    %56 = arith.mulf %53, %55 : vector<64x32xf32>
    %cst_26 = arith.constant dense<0.000000e+00> : vector<64xf32>
    %57 = vector.multi_reduction <add>, %56, %cst_26 [1] : vector<64x32xf32> to vector<64xf32>
    %58 = vector.shape_cast %57 : vector<64xf32> to vector<64x1xf32>
    %59 = arith.truncf %49 : vector<1x32xf32> to vector<1x32xbf16>
    %cst_27 = arith.constant dense<0.000000e+00> : vector<1x64xf32>
    %60 = tpu.matmul %59, %54, %cst_27 {dimension_numbers = #tpu.dot_dimension_numbers<[1], [1], [0], [0], [0, 0, 1, 0], [], []>} : vector<1x32xbf16>, vector<64x32xbf16>, vector<1x64xf32> -> vector<1x64xf32>
    %61 = vector.broadcast %58 : vector<64x1xf32> to vector<64x64xf32>
    %62 = vector.broadcast %60 : vector<1x64xf32> to vector<64x64xf32>
    %63 = arith.addf %61, %62 : vector<64x64xf32>
    %cst_28 = arith.constant 2.000000e-01 : f32
    %64 = vector.broadcast %cst_28 : f32 to vector<64x64xf32>
    %65 = arith.mulf %64, %63 : vector<64x64xf32>
    %66 = arith.maximumf %63, %65 : vector<64x64xf32>
    %67 = arith.addf %66, %6 : vector<64x64xf32>
    %cst_29 = arith.constant dense<0xFF800000> : vector<64xf32>
    %68 = vector.multi_reduction <maximumf>, %67, %cst_29 [1] : vector<64x64xf32> to vector<64xf32>
    %69 = vector.shape_cast %68 : vector<64xf32> to vector<64x1xf32>
    %70 = vector.broadcast %69 : vector<64x1xf32> to vector<64x64xf32>
    %71 = arith.subf %67, %70 : vector<64x64xf32>
    %72 = math.exp %71 : vector<64x64xf32>
    %cst_30 = arith.constant dense<0.000000e+00> : vector<64xf32>
    %73 = vector.multi_reduction <add>, %72, %cst_30 [1] : vector<64x64xf32> to vector<64xf32>
    %74 = vector.shape_cast %73 : vector<64xf32> to vector<64x1xf32>
    %cst_31 = arith.constant 1.000000e-30 : f32
    %75 = vector.broadcast %cst_31 : f32 to vector<64x1xf32>
    %76 = arith.maximumf %74, %75 : vector<64x1xf32>
    %77 = arith.truncf %72 : vector<64x64xf32> to vector<64x64xbf16>
    %cst_32 = arith.constant dense<0.000000e+00> : vector<64x32xf32>
    %78 = tpu.matmul %77, %54, %cst_32 {dimension_numbers = #tpu.dot_dimension_numbers<[1], [0], [0], [1], [0, 0, 1, 1], [], []>} : vector<64x64xbf16>, vector<64x32xbf16>, vector<64x32xf32> -> vector<64x32xf32>
    %79 = tpu.reciprocal %76 {approx = true} : vector<64x1xf32> -> vector<64x1xf32>
    %80 = vector.broadcast %79 : vector<64x1xf32> to vector<64x32xf32>
    %81 = arith.mulf %78, %80 : vector<64x32xf32>
    %c8 = arith.constant 8 : index
    %c0_33 = arith.constant 0 : index
    %82 = vector.load %arg5[%c8, %c0_33] : memref<15x128xf32, #tpu.memory_space<vmem>>, vector<1x32xf32>
    %c9 = arith.constant 9 : index
    %c0_34 = arith.constant 0 : index
    %83 = vector.load %arg5[%c9, %c0_34] : memref<15x128xf32, #tpu.memory_space<vmem>>, vector<1x32xf32>
    %84 = vector.broadcast %82 : vector<1x32xf32> to vector<64x32xf32>
    %85 = arith.mulf %81, %84 : vector<64x32xf32>
    %86 = vector.broadcast %83 : vector<1x32xf32> to vector<64x32xf32>
    %87 = arith.addf %85, %86 : vector<64x32xf32>
    %cst_35 = arith.constant 0.000000e+00 : f32
    %88 = vector.broadcast %cst_35 : f32 to vector<64x32xf32>
    %89 = arith.maximumf %87, %88 : vector<64x32xf32>
    %c4 = arith.constant 4 : index
    %c0_36 = arith.constant 0 : index
    %90 = vector.load %arg5[%c4, %c0_36] : memref<15x128xf32, #tpu.memory_space<vmem>>, vector<1x32xf32>
    %c5 = arith.constant 5 : index
    %c0_37 = arith.constant 0 : index
    %91 = vector.load %arg5[%c5, %c0_37] : memref<15x128xf32, #tpu.memory_space<vmem>>, vector<1x32xf32>
    %c0_38 = arith.constant 0 : index
    %c0_39 = arith.constant 0 : index
    %92 = vector.load %arg4[%c0_38, %c0_39] : memref<32x32xbf16, #tpu.memory_space<vmem>>, vector<32x32xbf16>
    %93 = arith.truncf %89 : vector<64x32xf32> to vector<64x32xbf16>
    %cst_40 = arith.constant dense<0.000000e+00> : vector<64x32xf32>
    %94 = tpu.matmul %93, %92, %cst_40 {dimension_numbers = #tpu.dot_dimension_numbers<[1], [0], [0], [1], [0, 0, 1, 1], [], []>} : vector<64x32xbf16>, vector<32x32xbf16>, vector<64x32xf32> -> vector<64x32xf32>
    %95 = arith.truncf %94 : vector<64x32xf32> to vector<64x32xbf16>
    %96 = vector.broadcast %91 : vector<1x32xf32> to vector<64x32xf32>
    %97 = arith.mulf %94, %96 : vector<64x32xf32>
    %cst_41 = arith.constant dense<0.000000e+00> : vector<64xf32>
    %98 = vector.multi_reduction <add>, %97, %cst_41 [1] : vector<64x32xf32> to vector<64xf32>
    %99 = vector.shape_cast %98 : vector<64xf32> to vector<64x1xf32>
    %100 = arith.truncf %90 : vector<1x32xf32> to vector<1x32xbf16>
    %cst_42 = arith.constant dense<0.000000e+00> : vector<1x64xf32>
    %101 = tpu.matmul %100, %95, %cst_42 {dimension_numbers = #tpu.dot_dimension_numbers<[1], [1], [0], [0], [0, 0, 1, 0], [], []>} : vector<1x32xbf16>, vector<64x32xbf16>, vector<1x64xf32> -> vector<1x64xf32>
    %102 = vector.broadcast %99 : vector<64x1xf32> to vector<64x64xf32>
    %103 = vector.broadcast %101 : vector<1x64xf32> to vector<64x64xf32>
    %104 = arith.addf %102, %103 : vector<64x64xf32>
    %cst_43 = arith.constant 2.000000e-01 : f32
    %105 = vector.broadcast %cst_43 : f32 to vector<64x64xf32>
    %106 = arith.mulf %105, %104 : vector<64x64xf32>
    %107 = arith.maximumf %104, %106 : vector<64x64xf32>
    %108 = arith.addf %107, %6 : vector<64x64xf32>
    %cst_44 = arith.constant dense<0xFF800000> : vector<64xf32>
    %109 = vector.multi_reduction <maximumf>, %108, %cst_44 [1] : vector<64x64xf32> to vector<64xf32>
    %110 = vector.shape_cast %109 : vector<64xf32> to vector<64x1xf32>
    %111 = vector.broadcast %110 : vector<64x1xf32> to vector<64x64xf32>
    %112 = arith.subf %108, %111 : vector<64x64xf32>
    %113 = math.exp %112 : vector<64x64xf32>
    %cst_45 = arith.constant dense<0.000000e+00> : vector<64xf32>
    %114 = vector.multi_reduction <add>, %113, %cst_45 [1] : vector<64x64xf32> to vector<64xf32>
    %115 = vector.shape_cast %114 : vector<64xf32> to vector<64x1xf32>
    %cst_46 = arith.constant 1.000000e-30 : f32
    %116 = vector.broadcast %cst_46 : f32 to vector<64x1xf32>
    %117 = arith.maximumf %115, %116 : vector<64x1xf32>
    %118 = arith.truncf %113 : vector<64x64xf32> to vector<64x64xbf16>
    %cst_47 = arith.constant dense<0.000000e+00> : vector<64x32xf32>
    %119 = tpu.matmul %118, %95, %cst_47 {dimension_numbers = #tpu.dot_dimension_numbers<[1], [0], [0], [1], [0, 0, 1, 1], [], []>} : vector<64x64xbf16>, vector<64x32xbf16>, vector<64x32xf32> -> vector<64x32xf32>
    %120 = tpu.reciprocal %117 {approx = true} : vector<64x1xf32> -> vector<64x1xf32>
    %121 = vector.broadcast %120 : vector<64x1xf32> to vector<64x32xf32>
    %122 = arith.mulf %119, %121 : vector<64x32xf32>
    %c0_48 = arith.constant 0 : index
    %c0_49 = arith.constant 0 : index
    %123 = vector.load %arg6[%c0_48, %c0_49] : memref<32x48xbf16, #tpu.memory_space<vmem>>, vector<32x48xbf16>
    %124 = arith.truncf %122 : vector<64x32xf32> to vector<64x32xbf16>
    %cst_50 = arith.constant dense<0.000000e+00> : vector<64x48xf32>
    %125 = tpu.matmul %124, %123, %cst_50 {dimension_numbers = #tpu.dot_dimension_numbers<[1], [0], [0], [1], [0, 0, 1, 1], [], []>} : vector<64x32xbf16>, vector<32x48xbf16>, vector<64x48xf32> -> vector<64x48xf32>
    %c12 = arith.constant 12 : index
    %c0_51 = arith.constant 0 : index
    %126 = vector.load %arg5[%c12, %c0_51] : memref<15x128xf32, #tpu.memory_space<vmem>>, vector<1x48xf32>
    %127 = vector.broadcast %126 : vector<1x48xf32> to vector<64x48xf32>
    %128 = arith.addf %125, %127 : vector<64x48xf32>
    %c10 = arith.constant 10 : index
    %c0_52 = arith.constant 0 : index
    %129 = vector.load %arg5[%c10, %c0_52] : memref<15x128xf32, #tpu.memory_space<vmem>>, vector<1x48xf32>
    %c11 = arith.constant 11 : index
    %c0_53 = arith.constant 0 : index
    %130 = vector.load %arg5[%c11, %c0_53] : memref<15x128xf32, #tpu.memory_space<vmem>>, vector<1x48xf32>
    %131 = vector.broadcast %129 : vector<1x48xf32> to vector<64x48xf32>
    %132 = arith.mulf %128, %131 : vector<64x48xf32>
    %133 = vector.broadcast %130 : vector<1x48xf32> to vector<64x48xf32>
    %134 = arith.addf %132, %133 : vector<64x48xf32>
    %cst_54 = arith.constant 0.000000e+00 : f32
    %135 = vector.broadcast %cst_54 : f32 to vector<64x48xf32>
    %136 = arith.maximumf %134, %135 : vector<64x48xf32>
    %c0_55 = arith.constant 0 : index
    %c0_56 = arith.constant 0 : index
    %137 = vector.load %arg7[%c0_55, %c0_56] : memref<48x32xbf16, #tpu.memory_space<vmem>>, vector<48x32xbf16>
    %138 = arith.truncf %136 : vector<64x48xf32> to vector<64x48xbf16>
    %cst_57 = arith.constant dense<0.000000e+00> : vector<64x32xf32>
    %139 = tpu.matmul %138, %137, %cst_57 {dimension_numbers = #tpu.dot_dimension_numbers<[1], [0], [0], [1], [0, 0, 1, 1], [], []>} : vector<64x48xbf16>, vector<48x32xbf16>, vector<64x32xf32> -> vector<64x32xf32>
    %c13 = arith.constant 13 : index
    %c0_58 = arith.constant 0 : index
    %140 = vector.load %arg5[%c13, %c0_58] : memref<15x128xf32, #tpu.memory_space<vmem>>, vector<1x32xf32>
    %141 = vector.broadcast %140 : vector<1x32xf32> to vector<64x32xf32>
    %142 = arith.addf %139, %141 : vector<64x32xf32>
    %cst_59 = arith.constant 0.000000e+00 : f32
    %143 = vector.broadcast %cst_59 : f32 to vector<64x32xf32>
    %144 = arith.maximumf %142, %143 : vector<64x32xf32>
    %c0_60 = arith.constant 0 : index
    %c0_61 = arith.constant 0 : index
    %145 = vector.load %arg8[%c0_60, %c0_61] : memref<32x8xbf16, #tpu.memory_space<vmem>>, vector<32x8xbf16>
    %146 = arith.truncf %144 : vector<64x32xf32> to vector<64x32xbf16>
    %cst_62 = arith.constant dense<0.000000e+00> : vector<64x8xf32>
    %147 = tpu.matmul %146, %145, %cst_62 {dimension_numbers = #tpu.dot_dimension_numbers<[1], [0], [0], [1], [0, 0, 1, 1], [], []>} : vector<64x32xbf16>, vector<32x8xbf16>, vector<64x8xf32> -> vector<64x8xf32>
    %c14 = arith.constant 14 : index
    %c0_63 = arith.constant 0 : index
    %148 = vector.load %arg5[%c14, %c0_63] : memref<15x128xf32, #tpu.memory_space<vmem>>, vector<1x8xf32>
    %149 = vector.broadcast %148 : vector<1x8xf32> to vector<64x8xf32>
    %150 = arith.addf %147, %149 : vector<64x8xf32>
    %c0_64 = arith.constant 0 : index
    %c0_65 = arith.constant 0 : index
    %151 = vector.load %arg9[%c0_64, %c0_65] : memref<64x8xf32, #tpu.memory_space<vmem>>, vector<64x8xf32>
    tpu.vector_store %arg9[%c0_64, %c0_65], %150 {strides = array<i32>} : memref<64x8xf32, #tpu.memory_space<vmem>>, vector<64x8xf32>,
    return
  }
}

</mosaic_0001>

<bundles_post_ra>
// kernel: dummy_fair_gat_forward.1
= control target key start
LH: loop header
LB: loop body
LE: loop exit
PB: predicated region body
PF: predicated region fallthrough
CT: control target
= control target key end

     0   :  { %vm89_vm0 = vcmask 130048   ;;  %v2137_v13 = vmov 0.0   ;;  %vm2138_vm1 = vmmov 0   ;;  %vm183_vm2 = vcmask 261120   ;;  %s2522_s2 = inlined_call_operand.vmem [shape: bf16[16,32], index: 2, kind: input, shape index: {}]   ;;  %s2523_s0 = inlined_call_operand.vmem [shape: f32[64,16], index: 0, kind: input, shape index: {}]   ;;  %s2524_s5 = inlined_call_operand.vmem [shape: f32[15,128], index: 5, kind: input, shape index: {}]   ;;  %s2525_s1 = inlined_call_operand.vmem [shape: s8[64,64], index: 1, kind: input, shape index: {}]   ;;  %s2526_s3 = inlined_call_operand.vmem [shape: bf16[32,32], index: 3, kind: input, shape index: {}]   ;;  %s2527_s4 = inlined_call_operand.vmem [shape: bf16[32,32], index: 4, kind: input, shape index: {}]   ;;  %s2528_s6 = inlined_call_operand.vmem [shape: bf16[32,48], index: 6, kind: input, shape index: {}]   ;;  %s2529_s7 = inlined_call_operand.vmem [shape: bf16[48,32], index: 7, kind: input, shape index: {}]   ;;  %s2530_s8 = inlined_call_operand.vmem [shape: bf16[32,8], index: 8, kind: input, shape index: {}]   ;;  %s2531_s9 = inlined_call_operand.vmem [shape: f32[64,8], index: 9, kind: output, shape index: {}]  }
   0x1   :  { %v2029_v0 = vld [vmem:[%s2522_s2] sm:$0xff]   ;;  %v68_v2 = vld [vmem:[%s2523_s0 + $0x8] sm:$0xff]  ;;  %v69_v3 = vld [vmem:[%s2523_s0 + $0x10] sm:$0xff]  ;;  %v264_v52 = vlaneseq  ;;  %vm300_vm8 = vcmask 523264   ;;  %vm1531_vm12 = vcmask 392192   ;;  %vm1719_vm13 = vcmask 64512  }
   0x2   :  { %v67_v1 = vld [vmem:[%s2523_s0] sm:$0xff]  ;;  %1870 = vmatprep.subr.bf16.mxu1 %v2029_v0  ;;  %v70_v5 = vld [vmem:[%s2523_s0 + $0x18] sm:$0xff]  ;;  %v72_v7 = vld [vmem:[%s2523_s0 + $0x28] sm:$0xff] }
   0x3   :  { %v79_v4 = vpack.c.bf16 %v68_v2, %v67_v1  ;;  %v71_v6 = vld [vmem:[%s2523_s0 + $0x20] sm:$0xff]  ;;  %1871 = vmatpush3.bf16.msra.mxu1 %v2029_v0  ;;  %v80_v8 = vpack.c.bf16 %v70_v5, %v69_v3  ;;  %v73_v10 = vld [vmem:[%s2523_s0 + $0x30] sm:$0xff]  ;;  %v74_v11 = vld [vmem:[%s2523_s0 + $0x38] sm:$0xff]  ;;  %v265_v56 = vshrl.u32 %v264_v52, 7 }
   0x4   :  { %v81_v9 = vpack.c.bf16 %v72_v7, %v71_v6  ;;  %v82_v12 = vpack.c.bf16 %v74_v11, %v73_v10  ;;  %1880 = vmatprep.subr.bf16.mxu1 %v2137_v13  ;;  %v1737_v14 = vld [vmem:[%s2524_s5 + $0x1] ss:$0 sm:$0xff]  ;;  %v75_v47 = vld [vmem:[%s2524_s5] sm:$0x1]  ;;  %v34_v57 = vld [vmem:[%s2525_s1 + $0x8] sm:$0xff] }
   0x5   :  { %1872 = vmatprep.mubr.msk.bf16.mxu1 %vm89_vm0, %v79_v4  ;;  %v208_v48 = vpack.c.bf16 %v75_v47, %v75_v47  ;;  %v33_v51 = vld [vmem:[%s2525_s1] sm:$0xff]  ;;  %v40_v63 = vunpack.c.1.s8 %v34_v57  ;;  %v2255_v0 = vsub.s32 0, %v265_v56  ;;  %v39_v1 = vunpack.c.0.s8 %v34_v57 }
   0x6   :  { %1873 = vmatmul.mubr.msk.bf16.vlgmr.msra.gmra.mxu1 %vm89_vm0, %v80_v8  ;;  %v36_v53 = vunpack.c.1.s8 %v33_v51  ;;  %v35_v54 = vunpack.c.0.s8 %v33_v51  ;;  %v38_v59 = vunpack.c.3.s8 %v33_v51  ;;  %v37_v60 = vunpack.c.2.s8 %v33_v51 }
   0x7   :  { %1876 = vmatprep.mubr.msk.bf16.mxu1 %vm89_vm0, %v81_v9  ;;  %v42_v2 = vunpack.c.3.s8 %v34_v57  ;;  %v48_v8 = vcvt.s32.f32 %v40_v63  ;;  %v47_v10 = vcvt.s32.f32 %v39_v1 }
   0x8   :  { %v44_v61 = vcvt.s32.f32 %v36_v53  ;;  %v43_v62 = vcvt.s32.f32 %v35_v54  ;;  %v46_v4 = vcvt.s32.f32 %v38_v59  ;;  %v45_v5 = vcvt.s32.f32 %v37_v60 }
   0x9   :  { %v50_v11 = vcvt.s32.f32 %v42_v2  ;;  %vm56_vm7 = vcmp.gt.f32.partialorder %v48_v8, 0.0  ;;  %vm55_vm9 = vcmp.gt.f32.partialorder %v47_v10, 0.0 }
   0xa   :  { %vm52_vm3 = vcmp.gt.f32.partialorder %v44_v61, 0.0  ;;  %vm51_vm4 = vcmp.gt.f32.partialorder %v43_v62, 0.0  ;;  %vm54_vm5 = vcmp.gt.f32.partialorder %v46_v4, 0.0  ;;  %vm53_vm6 = vcmp.gt.f32.partialorder %v45_v5, 0.0 }
   0xb   :  { %vm58_vm10 = vcmp.gt.f32.partialorder %v50_v11, 0.0 }
   0xe   :  { %1877 = vmatmul.mubr.msk.bf16.gmra.mxu1 %vm89_vm0, %v82_v12 }
   0xf   :  { %1888 = vmatprep.mubr.msk.bf16.mxu1 %vm2138_vm1, %v2137_v13 }
  0xc6   :  { %v1874_v15 = vpop.f32.mrf.mxu1 }
  0xc7   :  { %v177_v16 = vmul.f32 %v1874_v15, %v1737_v14 }
  0xc8   :  { %v136_v17 = vpop.f32.mrf.mxu1 }
  0xc9   :  { %v190_v18 = vsel %vm183_vm2, %v177_v16, 0.0  ;;  %v175_v19 = vmul.f32 %v1737_v14, %v136_v17 }
  0xca   :  { %191 = vadd.xlane.f32.xlu1 %v190_v18  ;;  %v1875_v20 = vpop.f32.mrf.mxu1 }
  0xcb   :  { %v178_v21 = vmul.f32 %v1875_v20, %v1737_v14  ;;  %v184_v22 = vsel %vm183_vm2, %v175_v19, 0.0  ;;  %v168_v41 = vpack.c.bf16 %v1875_v20, %v1874_v15 }
  0xcc   :  { %185 = vadd.xlane.f32.xlu0 %v184_v22  ;;  %v139_v23 = vpop.f32.mrf.mxu1 }
  0xcd   :  { %v176_v24 = vmul.f32 %v1737_v14, %v139_v23  ;;  %v193_v25 = vsel %vm183_vm2, %v178_v21, 0.0  ;;  %v167_v43 = vpack.c.bf16 %v139_v23, %v136_v17  ;;  %v216_v45 = vsel %vm183_vm2, %v168_v41, 0 }
  0xce   :  { %194 = vadd.xlane.f32.xlu1 %v193_v25  ;;  %v1878_v26 = vpop.f32.mrf.mxu1  ;;  %v41_v25 = vunpack.c.2.s8 %v34_v57 }
  0xcf   :  { %v187_v27 = vsel %vm183_vm2, %v176_v24, 0.0  ;;  %v181_v31 = vmul.f32 %v1878_v26, %v1737_v14  ;;  %v213_v46 = vsel %vm183_vm2, %v167_v43, 0 }
  0xd0   :  { %188 = vadd.xlane.f32.xlu0 %v187_v27  ;;  %v152_v28 = vpop.f32.mrf.mxu1 }
  0xd1   :  { %v179_v29 = vmul.f32 %v1737_v14, %v152_v28  ;;  %v202_v39 = vsel %vm183_vm2, %v181_v31, 0.0 }
  0xd2   :  { %v1879_v30 = vpop.f32.mrf.mxu1 }
  0xd3   :  { %v170_v32 = vpack.c.bf16 %v1879_v30, %v1878_v26  ;;  %v196_v33 = vsel %vm183_vm2, %v179_v29, 0.0  ;;  %v182_v38 = vmul.f32 %v1879_v30, %v1737_v14 }
  0xd4   :  { %197 = vadd.xlane.f32.xlu0 %v196_v33  ;;  %v155_v34 = vpop.f32.mrf.mxu1 }
  0xd5   :  { %v169_v35 = vpack.c.bf16 %v155_v34, %v152_v28  ;;  %v180_v36 = vmul.f32 %v1737_v14, %v155_v34  ;;  %1892 = vmatprep.subr.bf16.mxu0 %v170_v32  ;;  %v222_v37 = vsel %vm183_vm2, %v170_v32, 0  ;;  %v205_v42 = vsel %vm183_vm2, %v182_v38, 0.0 }
  0xd6   :  { %1881 = vmatpush3.bf16.xpose.msra.mxu1 %v222_v37  ;;  %1893 = vmatpush3.bf16.msra.mxu0 %v170_v32  ;;  %v2139_v14 = vmov -1e+30  }
  0xd7   :  { %1894 = vmatprep.subr.bf16.mxu0 %v169_v35  ;;  %v199_v40 = vsel %vm183_vm2, %v180_v36, 0.0  ;;  %1882 = vmatprep.subr.bf16.mxu1 %v2137_v13  ;;  %v219_v44 = vsel %vm183_vm2, %v169_v35, 0  ;;  %v2258_v15 = vsel %vm52_vm3, 0.0, %v2139_v14  ;;  %v2260_v16 = vsel %vm51_vm4, 0.0, %v2139_v14 }
  0xd8   :  { %203 = vadd.xlane.f32.xlu0 %v202_v39  ;;  %200 = vadd.xlane.f32.xlu1 %v199_v40  ;;  %v2263_v38 = vsel %vm54_vm5, 0.0, %v2139_v14  ;;  %v2266_v40 = vsel %vm53_vm6, 0.0, %v2139_v14  ;;  %v2277_v54 = vsel %vm55_vm9, 0.0, %v2139_v14  ;;  %v2283_v61 = vsel %vm58_vm10, 0.0, %v2139_v14 }
  0xda   :  { %1895 = vmatpush3.bf16.msra.mxu0 %v169_v35 }
  0xdb   :  { %1896 = vmatprep.subr.bf16.mxu0 %v168_v41 }
  0xdc   :  { %206 = vadd.xlane.f32.xlu1 %v205_v42 }
  0xde   :  { %1883 = vmatpush3.bf16.xpose.msra.mxu1 %v219_v44  ;;  %1897 = vmatpush3.bf16.msra.mxu0 %v168_v41  ;;  %v2271_v44 = vsel %vm56_vm7, 0.0, %v2139_v14 }
  0xdf   :  { %1898 = vmatprep.subr.bf16.mxu0 %v167_v43  ;;  %1884 = vmatprep.subr.bf16.mxu1 %v2137_v13 }
  0xe2   :  { %1899 = vmatpush3.bf16.msra.mxu0 %v167_v43 }
  0xe6   :  { %1885 = vmatpush3.bf16.xpose.msra.mxu1 %v216_v45  ;;  %v49_v45 = vcvt.s32.f32 %v41_v25 }
  0xe7   :  { %1886 = vmatprep.subr.bf16.mxu1 %v2137_v13 }
  0xe8   :  { %vm57_vm11 = vcmp.gt.f32.partialorder %v49_v45, 0.0 }
  0xe9   :  { %v2285_v62 = vsel %vm57_vm11, 0.0, %v2139_v14 }
  0xee   :  { %1887 = vmatpush3.bf16.xpose.msra.mxu1 %v213_v46 }
  0xef   :  { %1920 = vmatprep.subr.bf16.mxu1 %v2137_v13 }
  0xf5   :  { %1889 = vmatmul.mubr.msk.bf16.vlgmr.msra.gmra.mxu1 %vm183_vm2, %v208_v48 }
  0xf6   :  { %1928 = vmatprep.mubr.msk.bf16.mxu1 %vm2138_vm1, %v2137_v13 }
 0x153   :  { %v192_v50 = vpop.xlane.xlu1 %191 }
 0x155   :  { %v186_v49 = vpop.xlane.xlu0 %185 }
 0x157   :  { %v195_v58 = vpop.xlane.xlu1 %194 }
 0x159   :  { %v189_v55 = vpop.xlane.xlu0 %188 }
 0x15d   :  { %v198_v6 = vpop.xlane.xlu0 %197 }
 0x161   :  { %v201_v3 = vpop.xlane.xlu1 %200  ;;  %v204_v26 = vpop.xlane.xlu0 %203 }
 0x165   :  { %v207_v21 = vpop.xlane.xlu1 %206 }
 0x1b5   :  { %v258_v7 = vpop.f32.mrf.mxu1 }
 0x1b6   :  { %v267_v9 = vrot.slane %v258_v7, %v2255_v0 }
 0x1b7   :  { %v1890_v12 = vpop.f32.mrf.mxu1 }
 0x1b8   :  { %v269_v17 = vadd.f32 %v267_v9, %v189_v55  ;;  %v268_v18 = vadd.f32 %v267_v9, %v186_v49  ;;  %v271_v19 = vadd.f32 %v267_v9, %v195_v58  ;;  %v270_v20 = vadd.f32 %v267_v9, %v192_v50 }
 0x1b9   :  { %v261_v22 = vpop.f32.mrf.mxu1  ;;  %v273_v23 = vadd.f32 %v267_v9, %v201_v3  ;;  %v272_v24 = vadd.f32 %v267_v9, %v198_v6  ;;  %v275_v30 = vadd.f32 %v267_v9, %v207_v21  ;;  %v274_v35 = vadd.f32 %v267_v9, %v204_v26 }
 0x1ba   :  { %v277_v27 = vmul.f32 0.2, %v269_v17  ;;  %v276_v28 = vmul.f32 0.2, %v268_v18  ;;  %v279_v29 = vmul.f32 0.2, %v271_v19 }
 0x1bb   :  { %v1891_v31 = vpop.f32.mrf.mxu1  ;;  %v278_v32 = vmul.f32 0.2, %v270_v20  ;;  %v281_v33 = vmul.f32 0.2, %v273_v23  ;;  %v280_v34 = vmul.f32 0.2, %v272_v24 }
 0x1bc   :  { %v285_v36 = vmax.f32 %v269_v17, %v277_v27  ;;  %v284_v37 = vmax.f32 %v268_v18, %v276_v28  ;;  %v287_v39 = vmax.f32 %v271_v19, %v279_v29  ;;  %v283_v48 = vmul.f32 0.2, %v275_v30 }
 0x1bd   :  { %v286_v41 = vmax.f32 %v270_v20, %v278_v32  ;;  %v289_v46 = vmax.f32 %v273_v23, %v281_v33  ;;  %v288_v47 = vmax.f32 %v272_v24, %v280_v34  ;;  %v282_v49 = vmul.f32 0.2, %v274_v35 }
 0x1be   :  { %v293_v42 = vadd.f32 %v285_v36, %v2258_v15  ;;  %v292_v43 = vadd.f32 %v284_v37, %v2260_v16  ;;  %v295_v52 = vadd.f32 %v287_v39, %v2263_v38  ;;  %v291_v56 = vmax.f32 %v275_v30, %v283_v48 }
 0x1bf   :  { %v294_v53 = vadd.f32 %v286_v41, %v2266_v40  ;;  %v297_v55 = vadd.f32 %v289_v46, %v2271_v44  ;;  %v296_v59 = vadd.f32 %v288_v47, %v2277_v54  ;;  %v290_v60 = vmax.f32 %v274_v35, %v282_v49 }
 0x1c0   :  { %v304_v50 = vsel %vm300_vm8, %v293_v42, -inf  ;;  %v301_v51 = vsel %vm300_vm8, %v292_v43, -inf  ;;  %v310_v57 = vsel %vm300_vm8, %v295_v52, -inf  ;;  %v299_v2 = vadd.f32 %v291_v56, %v2283_v61 }
 0x1c1   :  { %305 = vmax.xlane.f32.xlu1 %v304_v50  ;;  %302 = vmax.xlane.f32.xlu0 %v301_v51  ;;  %v307_v58 = vsel %vm300_vm8, %v294_v53, -inf  ;;  %v316_v63 = vsel %vm300_vm8, %v297_v55, -inf  ;;  %v313_v1 = vsel %vm300_vm8, %v296_v59, -inf  ;;  %v298_v3 = vadd.f32 %v290_v60, %v2285_v62 }
 0x1c2   :  { %v322_v4 = vsel %vm300_vm8, %v299_v2, -inf }
 0x1c3   :  { %v319_v5 = vsel %vm300_vm8, %v298_v3, -inf }
 0x1c5   :  { %311 = vmax.xlane.f32.xlu1 %v310_v57  ;;  %308 = vmax.xlane.f32.xlu0 %v307_v58  ;;  %v2030_v57 = vld [vmem:[%s2526_s3 + $0x8] sm:$0xff]   ;;  %v2031_v58 = vld [vmem:[%s2526_s3] sm:$0xff]  }
 0x1c6   :  { %1908 = vmatprep.subr.bf16.mxu0 %v2030_v57 }
 0x1c9   :  { %317 = vmax.xlane.f32.xlu1 %v316_v63  ;;  %314 = vmax.xlane.f32.xlu0 %v313_v1 }
 0x1cd   :  { %323 = vmax.xlane.f32.xlu1 %v322_v4  ;;  %320 = vmax.xlane.f32.xlu0 %v319_v5 }
 0x24a   :  { %v306_v6 = vpop.xlane.xlu1 %305  ;;  %v303_v7 = vpop.xlane.xlu0 %302 }
 0x24b   :  { %v326_v8 = vsub.f32 %v293_v42, %v306_v6  ;;  %v325_v9 = vsub.f32 %v292_v43, %v303_v7 }
 0x24d   :  { %v335_v10 = vmul.f32 1.442695, %v326_v8  ;;  %v333_v11 = vmul.f32 1.442695, %v325_v9 }
 0x24e   :  { %v312_v12 = vpop.xlane.xlu1 %311  ;;  %v309_v14 = vpop.xlane.xlu0 %308 }
 0x24f   :  { %2041 = vpow2.f32 %v335_v10  ;;  %v328_v17 = vsub.f32 %v295_v52, %v312_v12  ;;  %v327_v18 = vsub.f32 %v294_v53, %v309_v14 }
 0x250   :  { %2043 = vpow2.f32 %v333_v11 }
 0x251   :  { %v339_v19 = vmul.f32 1.442695, %v328_v17  ;;  %v337_v20 = vmul.f32 1.442695, %v327_v18 }
 0x252   :  { %v318_v21 = vpop.xlane.xlu1 %317  ;;  %v315_v22 = vpop.xlane.xlu0 %314 }
 0x253   :  { %2045 = vpow2.f32 %v339_v19  ;;  %v330_v23 = vsub.f32 %v297_v55, %v318_v21  ;;  %v329_v24 = vsub.f32 %v296_v59, %v315_v22  ;;  %v1743_v22 = vld [vmem:[%s2524_s5 + $0x6] ss:$0 sm:$0xff] }
 0x254   :  { %2047 = vpow2.f32 %v337_v20 }
 0x255   :  { %v343_v25 = vmul.f32 1.442695, %v330_v23  ;;  %v341_v26 = vmul.f32 1.442695, %v329_v24 }
 0x256   :  { %v324_v27 = vpop.xlane.xlu1 %323  ;;  %v321_v28 = vpop.xlane.xlu0 %320 }
 0x257   :  { %2049 = vpow2.f32 %v343_v25  ;;  %v332_v29 = vsub.f32 %v299_v2, %v324_v27  ;;  %v331_v30 = vsub.f32 %v298_v3, %v321_v28 }
 0x258   :  { %2051 = vpow2.f32 %v341_v26 }
 0x259   :  { %v347_v31 = vmul.f32 1.442695, %v332_v29  ;;  %v345_v32 = vmul.f32 1.442695, %v331_v30 }
 0x25b   :  { %2053 = vpow2.f32 %v347_v31  ;;  %v1744_v31 = vld [vmem:[%s2524_s5 + $0x7] ss:$0 sm:$0xff] }
 0x25c   :  { %v2042_v33 = vpop.eup %2041  ;;  %2055 = vpow2.f32 %v345_v32 }
 0x25d   :  { %v2044_v34 = vpop.eup %2043  ;;  %v352_v35 = vsel %vm300_vm8, %v2042_v33, 0.0 }
 0x25e   :  { %353 = vadd.xlane.f32.xlu1 %v352_v35  ;;  %v349_v36 = vsel %vm300_vm8, %v2044_v34, 0.0  ;;  %v381_v37 = vpack.c.bf16 %v2042_v33, %v2044_v34 }
 0x25f   :  { %350 = vadd.xlane.f32.xlu0 %v349_v36 }
 0x260   :  { %v2046_v39 = vpop.eup %2045  ;;  %1900 = vmatprep.mubr.msk.bf16.mxu0 %vm300_vm8, %v381_v37 }
 0x261   :  { %v2048_v41 = vpop.eup %2047  ;;  %v358_v42 = vsel %vm300_vm8, %v2046_v39, 0.0 }
 0x262   :  { %359 = vadd.xlane.f32.xlu1 %v358_v42  ;;  %v355_v43 = vsel %vm300_vm8, %v2048_v41, 0.0  ;;  %v382_v45 = vpack.c.bf16 %v2046_v39, %v2048_v41 }
 0x263   :  { %356 = vadd.xlane.f32.xlu0 %v355_v43 }
 0x264   :  { %v2050_v46 = vpop.eup %2049  ;;  %1901 = vmatmul.mubr.msk.bf16.vlgmr.msra.gmra.mxu0 %vm300_vm8, %v382_v45 }
 0x265   :  { %v2052_v47 = vpop.eup %2051  ;;  %v364_v48 = vsel %vm300_vm8, %v2050_v46, 0.0  ;;  %1909 = vmatpush3.bf16.msra.mxu0 %v2030_v57 }
 0x266   :  { %365 = vadd.xlane.f32.xlu1 %v364_v48  ;;  %v361_v49 = vsel %vm300_vm8, %v2052_v47, 0.0  ;;  %v383_v50 = vpack.c.bf16 %v2050_v46, %v2052_v47  ;;  %1910 = vmatprep.subr.bf16.mxu0 %v2031_v58 }
 0x267   :  { %362 = vadd.xlane.f32.xlu0 %v361_v49 }
 0x268   :  { %v2054_v51 = vpop.eup %2053  ;;  %1904 = vmatprep.mubr.msk.bf16.mxu0 %vm300_vm8, %v383_v50 }
 0x269   :  { %v2056_v52 = vpop.eup %2055  ;;  %v370_v53 = vsel %vm300_vm8, %v2054_v51, 0.0  ;;  %1911 = vmatpush3.bf16.msra.mxu0 %v2031_v58 }
 0x26a   :  { %371 = vadd.xlane.f32.xlu1 %v370_v53  ;;  %v367_v55 = vsel %vm300_vm8, %v2056_v52, 0.0  ;;  %v384_v56 = vpack.c.bf16 %v2054_v51, %v2056_v52 }
 0x26b   :  { %368 = vadd.xlane.f32.xlu0 %v367_v55 }
 0x26c   :  { %1905 = vmatmul.mubr.msk.bf16.gmra.mxu0 %vm300_vm8, %v384_v56 }
 0x2e7   :  { %v354_v60 = vpop.xlane.xlu1 %353 }
 0x2e8   :  { %v351_v59 = vpop.xlane.xlu0 %350  ;;  %v374_v7 = vmax.f32 %v354_v60, 1e-30 }
 0x2e9   :  { %v373_v4 = vmax.f32 %v351_v59, 1e-30 }
 0x2eb   :  { %v360_v1 = vpop.xlane.xlu1 %359 }
 0x2ec   :  { %v357_v63 = vpop.xlane.xlu0 %356  ;;  %v376_v5 = vmax.f32 %v360_v1, 1e-30 }
 0x2ed   :  { %v375_v3 = vmax.f32 %v357_v63, 1e-30 }
 0x2ef   :  { %v366_v6 = vpop.xlane.xlu1 %365  ;;  %2057 = vrcp.f32 %v375_v3 }
 0x2f0   :  { %v363_v2 = vpop.xlane.xlu0 %362  ;;  %2059 = vrcp.f32 %v373_v4  ;;  %v378_v14 = vmax.f32 %v366_v6, 1e-30 }
 0x2f1   :  { %2061 = vrcp.f32 %v376_v5  ;;  %v377_v10 = vmax.f32 %v363_v2, 1e-30 }
 0x2f2   :  { %2063 = vrcp.f32 %v374_v7 }
 0x2f3   :  { %v372_v11 = vpop.xlane.xlu1 %371 }
 0x2f4   :  { %v369_v8 = vpop.xlane.xlu0 %368  ;;  %v380_v12 = vmax.f32 %v372_v11, 1e-30 }
 0x2f5   :  { %v379_v9 = vmax.f32 %v369_v8, 1e-30 }
 0x2f7   :  { %2065 = vrcp.f32 %v379_v9 }
 0x2f8   :  { %2067 = vrcp.f32 %v377_v10 }
 0x2f9   :  { %2069 = vrcp.f32 %v380_v12 }
 0x2fa   :  { %2071 = vrcp.f32 %v378_v14 }
 0x2fc   :  { %v2058_v18 = vpop.eup %2057 }
 0x2fd   :  { %v2060_v19 = vpop.eup %2059 }
 0x2fe   :  { %v2062_v24 = vpop.eup %2061 }
 0x2ff   :  { %v2064_v28 = vpop.eup %2063 }
 0x304   :  { %v2066_v35 = vpop.eup %2065 }
 0x305   :  { %v2068_v41 = vpop.eup %2067 }
 0x306   :  { %v2070_v50 = vpop.eup %2069 }
 0x307   :  { %v2072_v55 = vpop.eup %2071 }
 0x324   :  { %v1902_v17 = vpop.f32.mrf.mxu0 }
 0x325   :  { %v472_v20 = vmul.f32 %v2058_v18, %v1902_v17  ;;  %v1751_v18 = vld [vmem:[%s2524_s5 + $0x3] ss:$0 sm:$0xff] }
 0x326   :  { %v431_v21 = vpop.f32.mrf.mxu0 }
 0x327   :  { %v470_v23 = vmul.f32 %v2060_v19, %v431_v21  ;;  %v486_v29 = vmul.f32 %v1743_v22, %v472_v20 }
 0x328   :  { %v1903_v25 = vpop.f32.mrf.mxu0 }
 0x329   :  { %v484_v26 = vmul.f32 %v1743_v22, %v470_v23  ;;  %v473_v27 = vmul.f32 %v2062_v24, %v1903_v25  ;;  %v498_v42 = vadd.f32 %v1744_v31, %v486_v29 }
 0x32a   :  { %v434_v30 = vpop.f32.mrf.mxu0 }
 0x32b   :  { %v487_v32 = vmul.f32 %v1743_v22, %v473_v27  ;;  %v471_v33 = vmul.f32 %v2064_v28, %v434_v30  ;;  %v496_v36 = vadd.f32 %v1744_v31, %v484_v26  ;;  %v506_v56 = vmax.f32 %v498_v42, 0.0 }
 0x32c   :  { %v1906_v34 = vpop.f32.mrf.mxu0 }
 0x32d   :  { %v499_v37 = vadd.f32 %v1744_v31, %v487_v32  ;;  %v485_v39 = vmul.f32 %v1743_v22, %v471_v33  ;;  %v476_v43 = vmul.f32 %v2066_v35, %v1906_v34  ;;  %v504_v51 = vmax.f32 %v496_v36, 0.0 }
 0x32e   :  { %v447_v45 = vpop.f32.mrf.mxu0 }
 0x32f   :  { %v497_v46 = vadd.f32 %v1744_v31, %v485_v39  ;;  %v474_v47 = vmul.f32 %v2068_v41, %v447_v45  ;;  %v507_v48 = vmax.f32 %v499_v37, 0.0  ;;  %v490_v57 = vmul.f32 %v1743_v22, %v476_v43 }
 0x330   :  { %v1907_v49 = vpop.f32.mrf.mxu0 }
 0x331   :  { %v505_v52 = vmax.f32 %v497_v46, 0.0  ;;  %v488_v53 = vmul.f32 %v1743_v22, %v474_v47  ;;  %v477_v58 = vmul.f32 %v2070_v50, %v1907_v49  ;;  %v519_v1 = vpack.c.bf16 %v507_v48, %v506_v56 }
 0x332   :  { %v450_v59 = vpop.f32.mrf.mxu0  ;;  %v502_v5 = vadd.f32 %v1744_v31, %v490_v57 }
 0x333   :  { %v518_v60 = vpack.c.bf16 %v505_v52, %v504_v51  ;;  %v475_v63 = vmul.f32 %v2072_v55, %v450_v59  ;;  %v491_v2 = vmul.f32 %v1743_v22, %v477_v58  ;;  %v500_v3 = vadd.f32 %v1744_v31, %v488_v53  ;;  %v512_v53 = vld [vmem:[%s2524_s5 + $0x2] sm:$0x1] }
 0x334   :  { %v510_v11 = vmax.f32 %v502_v5, 0.0  ;;  %v651_v55 = vpack.c.bf16 %v512_v53, %v512_v53 }
 0x335   :  { %v489_v4 = vmul.f32 %v1743_v22, %v475_v63  ;;  %1912 = vmatprep.mubr.msk.bf16.mxu0 %vm183_vm2, %v518_v60  ;;  %v503_v6 = vadd.f32 %v1744_v31, %v491_v2  ;;  %v508_v9 = vmax.f32 %v500_v3, 0.0 }
 0x336   :  { %1913 = vmatmul.mubr.msk.bf16.vlgmr.msra.gmra.mxu0 %vm183_vm2, %v519_v1 }
 0x337   :  { %v501_v7 = vadd.f32 %v1744_v31, %v489_v4  ;;  %v511_v8 = vmax.f32 %v503_v6, 0.0 }
 0x339   :  { %v509_v10 = vmax.f32 %v501_v7, 0.0  ;;  %v521_v14 = vpack.c.bf16 %v511_v8, %v510_v11 }
 0x33b   :  { %v520_v12 = vpack.c.bf16 %v509_v10, %v508_v9 }
 0x33d   :  { %1916 = vmatprep.mubr.msk.bf16.mxu0 %vm183_vm2, %v520_v12 }
 0x33e   :  { %1917 = vmatmul.mubr.msk.bf16.gmra.mxu0 %vm183_vm2, %v521_v14 }
 0x3f6   :  { %v1914_v17 = vpop.f32.mrf.mxu0 }
 0x3f7   :  { %v621_v22 = vmul.f32 %v1914_v17, %v1751_v18 }
 0x3f8   :  { %v580_v19 = vpop.f32.mrf.mxu0 }
 0x3f9   :  { %v619_v20 = vmul.f32 %v1751_v18, %v580_v19  ;;  %v633_v28 = vsel %vm183_vm2, %v621_v22, 0.0 }
 0x3fa   :  { %v1915_v21 = vpop.f32.mrf.mxu0 }
 0x3fb   :  { %v627_v23 = vsel %vm183_vm2, %v619_v20, 0.0  ;;  %v622_v27 = vmul.f32 %v1915_v21, %v1751_v18  ;;  %v612_v47 = vpack.c.bf16 %v1915_v21, %v1914_v17 }
 0x3fc   :  { %628 = vadd.xlane.f32.xlu0 %v627_v23  ;;  %v583_v24 = vpop.f32.mrf.mxu0 }
 0x3fd   :  { %v620_v25 = vmul.f32 %v1751_v18, %v583_v24  ;;  %v636_v35 = vsel %vm183_vm2, %v622_v27, 0.0  ;;  %v611_v49 = vpack.c.bf16 %v583_v24, %v580_v19  ;;  %v659_v51 = vsel %vm183_vm2, %v612_v47, 0 }
 0x3fe   :  { %v1918_v26 = vpop.f32.mrf.mxu0 }
 0x3ff   :  { %v630_v29 = vsel %vm183_vm2, %v620_v25, 0.0  ;;  %v625_v33 = vmul.f32 %v1918_v26, %v1751_v18  ;;  %v656_v52 = vsel %vm183_vm2, %v611_v49, 0 }
 0x400   :  { %634 = vadd.xlane.f32.xlu0 %v633_v28  ;;  %631 = vadd.xlane.f32.xlu1 %v630_v29  ;;  %v596_v30 = vpop.f32.mrf.mxu0 }
 0x401   :  { %v623_v31 = vmul.f32 %v1751_v18, %v596_v30  ;;  %v645_v45 = vsel %vm183_vm2, %v625_v33, 0.0 }
 0x402   :  { %v1919_v32 = vpop.f32.mrf.mxu0 }
 0x403   :  { %v614_v34 = vpack.c.bf16 %v1919_v32, %v1918_v26  ;;  %v639_v36 = vsel %vm183_vm2, %v623_v31, 0.0  ;;  %v626_v43 = vmul.f32 %v1919_v32, %v1751_v18 }
 0x404   :  { %637 = vadd.xlane.f32.xlu1 %v636_v35  ;;  %640 = vadd.xlane.f32.xlu0 %v639_v36  ;;  %v599_v37 = vpop.f32.mrf.mxu0 }
 0x405   :  { %v613_v39 = vpack.c.bf16 %v599_v37, %v596_v30  ;;  %v624_v41 = vmul.f32 %v1751_v18, %v599_v37  ;;  %1932 = vmatprep.subr.bf16.mxu0 %v614_v34  ;;  %v665_v42 = vsel %vm183_vm2, %v614_v34, 0  ;;  %v648_v48 = vsel %vm183_vm2, %v626_v43, 0.0 }
 0x406   :  { %1921 = vmatpush3.bf16.xpose.msra.mxu1 %v665_v42  ;;  %1933 = vmatpush3.bf16.msra.mxu0 %v614_v34 }
 0x407   :  { %1934 = vmatprep.subr.bf16.mxu0 %v613_v39  ;;  %v642_v46 = vsel %vm183_vm2, %v624_v41, 0.0  ;;  %1922 = vmatprep.subr.bf16.mxu1 %v2137_v13  ;;  %v662_v50 = vsel %vm183_vm2, %v613_v39, 0 }
 0x408   :  { %646 = vadd.xlane.f32.xlu0 %v645_v45  ;;  %643 = vadd.xlane.f32.xlu1 %v642_v46 }
 0x40a   :  { %1935 = vmatpush3.bf16.msra.mxu0 %v613_v39 }
 0x40b   :  { %1936 = vmatprep.subr.bf16.mxu0 %v612_v47 }
 0x40c   :  { %649 = vadd.xlane.f32.xlu1 %v648_v48 }
 0x40e   :  { %1923 = vmatpush3.bf16.xpose.msra.mxu1 %v662_v50  ;;  %1937 = vmatpush3.bf16.msra.mxu0 %v612_v47 }
 0x40f   :  { %1938 = vmatprep.subr.bf16.mxu0 %v611_v49  ;;  %1924 = vmatprep.subr.bf16.mxu1 %v2137_v13 }
 0x412   :  { %1939 = vmatpush3.bf16.msra.mxu0 %v611_v49 }
 0x416   :  { %1925 = vmatpush3.bf16.xpose.msra.mxu1 %v659_v51 }
 0x417   :  { %1926 = vmatprep.subr.bf16.mxu1 %v2137_v13 }
 0x41e   :  { %1927 = vmatpush3.bf16.xpose.msra.mxu1 %v656_v52 }
 0x41f   :  { %1960 = vmatprep.subr.bf16.mxu1 %v2137_v13 }
 0x425   :  { %1929 = vmatmul.mubr.msk.bf16.vlgmr.msra.gmra.mxu1 %vm183_vm2, %v651_v55 }
 0x426   :  { %1968 = vmatprep.mubr.msk.bf16.mxu1 %vm2138_vm1, %v2137_v13 }
 0x485   :  { %v629_v57 = vpop.xlane.xlu0 %628 }
 0x489   :  { %v632_v56 = vpop.xlane.xlu1 %631  ;;  %v635_v59 = vpop.xlane.xlu0 %634 }
 0x48d   :  { %v638_v58 = vpop.xlane.xlu1 %637  ;;  %v641_v63 = vpop.xlane.xlu0 %640 }
 0x491   :  { %v644_v60 = vpop.xlane.xlu1 %643  ;;  %v647_v12 = vpop.xlane.xlu0 %646 }
 0x495   :  { %v650_v8 = vpop.xlane.xlu1 %649 }
 0x4e5   :  { %v701_v1 = vpop.f32.mrf.mxu1 }
 0x4e6   :  { %v710_v2 = vrot.slane %v701_v1, %v2255_v0 }
 0x4e7   :  { %v1930_v3 = vpop.f32.mrf.mxu1 }
 0x4e8   :  { %v712_v4 = vadd.f32 %v710_v2, %v632_v56  ;;  %v711_v5 = vadd.f32 %v710_v2, %v629_v57  ;;  %v714_v6 = vadd.f32 %v710_v2, %v638_v58  ;;  %v713_v7 = vadd.f32 %v710_v2, %v635_v59 }
 0x4e9   :  { %v704_v9 = vpop.f32.mrf.mxu1  ;;  %v716_v10 = vadd.f32 %v710_v2, %v644_v60  ;;  %v715_v11 = vadd.f32 %v710_v2, %v641_v63  ;;  %v718_v19 = vadd.f32 %v710_v2, %v650_v8  ;;  %v717_v24 = vadd.f32 %v710_v2, %v647_v12 }
 0x4ea   :  { %v720_v14 = vmul.f32 0.2, %v712_v4  ;;  %v719_v17 = vmul.f32 0.2, %v711_v5  ;;  %v722_v18 = vmul.f32 0.2, %v714_v6 }
 0x4eb   :  { %v1931_v20 = vpop.f32.mrf.mxu1  ;;  %v721_v21 = vmul.f32 0.2, %v713_v7  ;;  %v724_v22 = vmul.f32 0.2, %v716_v10  ;;  %v723_v23 = vmul.f32 0.2, %v715_v11 }
 0x4ec   :  { %v728_v25 = vmax.f32 %v712_v4, %v720_v14  ;;  %v727_v26 = vmax.f32 %v711_v5, %v719_v17  ;;  %v730_v27 = vmax.f32 %v714_v6, %v722_v18  ;;  %v726_v33 = vmul.f32 0.2, %v718_v19 }
 0x4ed   :  { %v729_v28 = vmax.f32 %v713_v7, %v721_v21  ;;  %v732_v31 = vmax.f32 %v716_v10, %v724_v22  ;;  %v731_v32 = vmax.f32 %v715_v11, %v723_v23  ;;  %v725_v34 = vmul.f32 0.2, %v717_v24 }
 0x4ee   :  { %v736_v29 = vadd.f32 %v728_v25, %v2258_v15  ;;  %v735_v30 = vadd.f32 %v727_v26, %v2260_v16  ;;  %v738_v37 = vadd.f32 %v730_v27, %v2263_v38  ;;  %v734_v42 = vmax.f32 %v718_v19, %v726_v33 }
 0x4ef   :  { %v737_v39 = vadd.f32 %v729_v28, %v2266_v40  ;;  %v740_v41 = vadd.f32 %v732_v31, %v2271_v44  ;;  %v739_v46 = vadd.f32 %v731_v32, %v2277_v54  ;;  %v733_v47 = vmax.f32 %v717_v24, %v725_v34 }
 0x4f0   :  { %v746_v35 = vsel %vm300_vm8, %v736_v29, -inf  ;;  %v743_v36 = vsel %vm300_vm8, %v735_v30, -inf  ;;  %v752_v43 = vsel %vm300_vm8, %v738_v37, -inf  ;;  %v742_v50 = vadd.f32 %v734_v42, %v2283_v61 }
 0x4f1   :  { %747 = vmax.xlane.f32.xlu1 %v746_v35  ;;  %744 = vmax.xlane.f32.xlu0 %v743_v36  ;;  %v749_v45 = vsel %vm300_vm8, %v737_v39, -inf  ;;  %v758_v48 = vsel %vm300_vm8, %v740_v41, -inf  ;;  %v755_v49 = vsel %vm300_vm8, %v739_v46, -inf  ;;  %v741_v51 = vadd.f32 %v733_v47, %v2285_v62 }
 0x4f2   :  { %v764_v52 = vsel %vm300_vm8, %v742_v50, -inf }
 0x4f3   :  { %v761_v53 = vsel %vm300_vm8, %v741_v51, -inf }
 0x4f5   :  { %753 = vmax.xlane.f32.xlu1 %v752_v43  ;;  %750 = vmax.xlane.f32.xlu0 %v749_v45  ;;  %v2032_v43 = vld [vmem:[%s2527_s4 + $0x8] sm:$0xff]   ;;  %v2033_v45 = vld [vmem:[%s2527_s4] sm:$0xff]  }
 0x4f6   :  { %1948 = vmatprep.subr.bf16.mxu0 %v2032_v43 }
 0x4f9   :  { %759 = vmax.xlane.f32.xlu1 %v758_v48  ;;  %756 = vmax.xlane.f32.xlu0 %v755_v49 }
 0x4fd   :  { %765 = vmax.xlane.f32.xlu1 %v764_v52  ;;  %762 = vmax.xlane.f32.xlu0 %v761_v53 }
 0x57a   :  { %v748_v55 = vpop.xlane.xlu1 %747  ;;  %v745_v56 = vpop.xlane.xlu0 %744 }
 0x57b   :  { %v768_v57 = vsub.f32 %v736_v29, %v748_v55  ;;  %v767_v58 = vsub.f32 %v735_v30, %v745_v56 }
 0x57d   :  { %v777_v59 = vmul.f32 1.442695, %v768_v57  ;;  %v775_v60 = vmul.f32 1.442695, %v767_v58 }
 0x57e   :  { %v754_v63 = vpop.xlane.xlu1 %753  ;;  %v751_v1 = vpop.xlane.xlu0 %750 }
 0x57f   :  { %2073 = vpow2.f32 %v777_v59  ;;  %v770_v2 = vsub.f32 %v738_v37, %v754_v63  ;;  %v769_v3 = vsub.f32 %v737_v39, %v751_v1 }
 0x580   :  { %2075 = vpow2.f32 %v775_v60 }
 0x581   :  { %v781_v4 = vmul.f32 1.442695, %v770_v2  ;;  %v779_v5 = vmul.f32 1.442695, %v769_v3 }
 0x582   :  { %v760_v6 = vpop.xlane.xlu1 %759  ;;  %v757_v7 = vpop.xlane.xlu0 %756 }
 0x583   :  { %2077 = vpow2.f32 %v781_v4  ;;  %v772_v8 = vsub.f32 %v740_v41, %v760_v6  ;;  %v771_v9 = vsub.f32 %v739_v46, %v757_v7  ;;  %v1757_v7 = vld [vmem:[%s2524_s5 + $0x8] ss:$0 sm:$0xff] }
 0x584   :  { %2079 = vpow2.f32 %v779_v5 }
 0x585   :  { %v785_v10 = vmul.f32 1.442695, %v772_v8  ;;  %v783_v11 = vmul.f32 1.442695, %v771_v9 }
 0x586   :  { %v766_v12 = vpop.xlane.xlu1 %765  ;;  %v763_v14 = vpop.xlane.xlu0 %762 }
 0x587   :  { %2081 = vpow2.f32 %v785_v10  ;;  %v774_v17 = vsub.f32 %v742_v50, %v766_v12  ;;  %v773_v18 = vsub.f32 %v741_v51, %v763_v14 }
 0x588   :  { %2083 = vpow2.f32 %v783_v11 }
 0x589   :  { %v789_v19 = vmul.f32 1.442695, %v774_v17  ;;  %v787_v20 = vmul.f32 1.442695, %v773_v18 }
 0x58b   :  { %2085 = vpow2.f32 %v789_v19  ;;  %v1758_v19 = vld [vmem:[%s2524_s5 + $0x9] ss:$0 sm:$0xff] }
 0x58c   :  { %v2074_v21 = vpop.eup %2073  ;;  %2087 = vpow2.f32 %v787_v20 }
 0x58d   :  { %v2076_v22 = vpop.eup %2075  ;;  %v794_v23 = vsel %vm300_vm8, %v2074_v21, 0.0 }
 0x58e   :  { %795 = vadd.xlane.f32.xlu1 %v794_v23  ;;  %v791_v24 = vsel %vm300_vm8, %v2076_v22, 0.0  ;;  %v823_v25 = vpack.c.bf16 %v2074_v21, %v2076_v22 }
 0x58f   :  { %792 = vadd.xlane.f32.xlu0 %v791_v24 }
 0x590   :  { %v2078_v26 = vpop.eup %2077  ;;  %1940 = vmatprep.mubr.msk.bf16.mxu0 %vm300_vm8, %v823_v25 }
 0x591   :  { %v2080_v27 = vpop.eup %2079  ;;  %v800_v28 = vsel %vm300_vm8, %v2078_v26, 0.0 }
 0x592   :  { %v824_v29 = vpack.c.bf16 %v2078_v26, %v2080_v27  ;;  %801 = vadd.xlane.f32.xlu1 %v800_v28  ;;  %v797_v30 = vsel %vm300_vm8, %v2080_v27, 0.0 }
 0x593   :  { %798 = vadd.xlane.f32.xlu0 %v797_v30 }
 0x594   :  { %v2082_v31 = vpop.eup %2081  ;;  %1941 = vmatmul.mubr.msk.bf16.vlgmr.msra.gmra.mxu0 %vm300_vm8, %v824_v29 }
 0x595   :  { %v2084_v32 = vpop.eup %2083  ;;  %v806_v33 = vsel %vm300_vm8, %v2082_v31, 0.0  ;;  %1949 = vmatpush3.bf16.msra.mxu0 %v2032_v43 }
 0x596   :  { %807 = vadd.xlane.f32.xlu1 %v806_v33  ;;  %v803_v34 = vsel %vm300_vm8, %v2084_v32, 0.0  ;;  %v825_v35 = vpack.c.bf16 %v2082_v31, %v2084_v32  ;;  %1950 = vmatprep.subr.bf16.mxu0 %v2033_v45 }
 0x597   :  { %804 = vadd.xlane.f32.xlu0 %v803_v34 }
 0x598   :  { %v2086_v36 = vpop.eup %2085  ;;  %1944 = vmatprep.mubr.msk.bf16.mxu0 %vm300_vm8, %v825_v35 }
 0x599   :  { %v2088_v37 = vpop.eup %2087  ;;  %v812_v39 = vsel %vm300_vm8, %v2086_v36, 0.0  ;;  %1951 = vmatpush3.bf16.msra.mxu0 %v2033_v45 }
 0x59a   :  { %813 = vadd.xlane.f32.xlu1 %v812_v39  ;;  %v809_v41 = vsel %vm300_vm8, %v2088_v37, 0.0  ;;  %v826_v42 = vpack.c.bf16 %v2086_v36, %v2088_v37 }
 0x59b   :  { %810 = vadd.xlane.f32.xlu0 %v809_v41 }
 0x59c   :  { %1945 = vmatmul.mubr.msk.bf16.gmra.mxu0 %vm300_vm8, %v826_v42 }
 0x617   :  { %v796_v47 = vpop.xlane.xlu1 %795 }
 0x618   :  { %v793_v46 = vpop.xlane.xlu0 %792  ;;  %v816_v56 = vmax.f32 %v796_v47, 1e-30 }
 0x619   :  { %v815_v52 = vmax.f32 %v793_v46, 1e-30 }
 0x61b   :  { %v802_v49 = vpop.xlane.xlu1 %801 }
 0x61c   :  { %v799_v48 = vpop.xlane.xlu0 %798  ;;  %v818_v53 = vmax.f32 %v802_v49, 1e-30 }
 0x61d   :  { %v817_v51 = vmax.f32 %v799_v48, 1e-30 }
 0x61f   :  { %v808_v55 = vpop.xlane.xlu1 %807  ;;  %2089 = vrcp.f32 %v817_v51 }
 0x620   :  { %v805_v50 = vpop.xlane.xlu0 %804  ;;  %2091 = vrcp.f32 %v815_v52  ;;  %v820_v1 = vmax.f32 %v808_v55, 1e-30 }
 0x621   :  { %2093 = vrcp.f32 %v818_v53  ;;  %v819_v59 = vmax.f32 %v805_v50, 1e-30 }
 0x622   :  { %2095 = vrcp.f32 %v816_v56 }
 0x623   :  { %v814_v60 = vpop.xlane.xlu1 %813 }
 0x624   :  { %v811_v57 = vpop.xlane.xlu0 %810  ;;  %v822_v63 = vmax.f32 %v814_v60, 1e-30 }
 0x625   :  { %v821_v58 = vmax.f32 %v811_v57, 1e-30 }
 0x627   :  { %2097 = vrcp.f32 %v821_v58 }
 0x628   :  { %2099 = vrcp.f32 %v819_v59 }
 0x629   :  { %2101 = vrcp.f32 %v822_v63 }
 0x62a   :  { %2103 = vrcp.f32 %v820_v1 }
 0x62c   :  { %v2090_v3 = vpop.eup %2089 }
 0x62d   :  { %v2092_v4 = vpop.eup %2091 }
 0x62e   :  { %v2094_v9 = vpop.eup %2093 }
 0x62f   :  { %v2096_v14 = vpop.eup %2095 }
 0x634   :  { %v2098_v23 = vpop.eup %2097 }
 0x635   :  { %v2100_v27 = vpop.eup %2099 }
 0x636   :  { %v2102_v35 = vpop.eup %2101 }
 0x637   :  { %v2104_v41 = vpop.eup %2103 }
 0x654   :  { %v1942_v2 = vpop.f32.mrf.mxu0 }
 0x655   :  { %v914_v5 = vmul.f32 %v2090_v3, %v1942_v2  ;;  %v1765_v3 = vld [vmem:[%s2524_s5 + $0x5] ss:$0 sm:$0xff] }
 0x656   :  { %v873_v6 = vpop.f32.mrf.mxu0 }
 0x657   :  { %v912_v8 = vmul.f32 %v2092_v4, %v873_v6  ;;  %v928_v17 = vmul.f32 %v1757_v7, %v914_v5 }
 0x658   :  { %v1943_v10 = vpop.f32.mrf.mxu0 }
 0x659   :  { %v926_v11 = vmul.f32 %v1757_v7, %v912_v8  ;;  %v915_v12 = vmul.f32 %v2094_v9, %v1943_v10  ;;  %v940_v28 = vadd.f32 %v1758_v19, %v928_v17 }
 0x65a   :  { %v876_v18 = vpop.f32.mrf.mxu0 }
 0x65b   :  { %v929_v20 = vmul.f32 %v1757_v7, %v915_v12  ;;  %v913_v21 = vmul.f32 %v2096_v14, %v876_v18  ;;  %v938_v24 = vadd.f32 %v1758_v19, %v926_v11  ;;  %v948_v42 = vmax.f32 %v940_v28, 0.0 }
 0x65c   :  { %v1946_v22 = vpop.f32.mrf.mxu0 }
 0x65d   :  { %v941_v25 = vadd.f32 %v1758_v19, %v929_v20  ;;  %v927_v26 = vmul.f32 %v1757_v7, %v913_v21  ;;  %v918_v29 = vmul.f32 %v2098_v23, %v1946_v22  ;;  %v946_v36 = vmax.f32 %v938_v24, 0.0 }
 0x65e   :  { %v889_v30 = vpop.f32.mrf.mxu0 }
 0x65f   :  { %v939_v31 = vadd.f32 %v1758_v19, %v927_v26  ;;  %v916_v32 = vmul.f32 %v2100_v27, %v889_v30  ;;  %v949_v33 = vmax.f32 %v941_v25, 0.0  ;;  %v932_v43 = vmul.f32 %v1757_v7, %v918_v29 }
 0x660   :  { %v1947_v34 = vpop.f32.mrf.mxu0 }
 0x661   :  { %v947_v37 = vmax.f32 %v939_v31, 0.0  ;;  %v930_v39 = vmul.f32 %v1757_v7, %v916_v32  ;;  %v919_v45 = vmul.f32 %v2102_v35, %v1947_v34  ;;  %v961_v49 = vpack.c.bf16 %v949_v33, %v948_v42 }
 0x662   :  { %v892_v46 = vpop.f32.mrf.mxu0  ;;  %v944_v53 = vadd.f32 %v1758_v19, %v932_v43 }
 0x663   :  { %v960_v47 = vpack.c.bf16 %v947_v37, %v946_v36  ;;  %v917_v48 = vmul.f32 %v2104_v41, %v892_v46  ;;  %v933_v50 = vmul.f32 %v1757_v7, %v919_v45  ;;  %v942_v51 = vadd.f32 %v1758_v19, %v930_v39  ;;  %v954_v39 = vld [vmem:[%s2524_s5 + $0x4] sm:$0x1] }
 0x664   :  { %v952_v60 = vmax.f32 %v944_v53, 0.0  ;;  %v1093_v41 = vpack.c.bf16 %v954_v39, %v954_v39 }
 0x665   :  { %v931_v52 = vmul.f32 %v1757_v7, %v917_v48  ;;  %1952 = vmatprep.mubr.msk.bf16.mxu0 %vm183_vm2, %v960_v47  ;;  %v945_v55 = vadd.f32 %v1758_v19, %v933_v50  ;;  %v950_v58 = vmax.f32 %v942_v51, 0.0 }
 0x666   :  { %1953 = vmatmul.mubr.msk.bf16.vlgmr.msra.gmra.mxu0 %vm183_vm2, %v961_v49 }
 0x667   :  { %v943_v56 = vadd.f32 %v1758_v19, %v931_v52  ;;  %v953_v57 = vmax.f32 %v945_v55, 0.0 }
 0x669   :  { %v951_v59 = vmax.f32 %v943_v56, 0.0  ;;  %v963_v1 = vpack.c.bf16 %v953_v57, %v952_v60 }
 0x66b   :  { %v962_v63 = vpack.c.bf16 %v951_v59, %v950_v58 }
 0x66d   :  { %1956 = vmatprep.mubr.msk.bf16.mxu0 %vm183_vm2, %v962_v63 }
 0x66e   :  { %1957 = vmatmul.mubr.msk.bf16.gmra.mxu0 %vm183_vm2, %v963_v1 }
 0x726   :  { %v1954_v2 = vpop.f32.mrf.mxu0 }
 0x727   :  { %v1063_v7 = vmul.f32 %v1954_v2, %v1765_v3 }
 0x728   :  { %v1022_v4 = vpop.f32.mrf.mxu0 }
 0x729   :  { %v1061_v5 = vmul.f32 %v1765_v3, %v1022_v4  ;;  %v1075_v14 = vsel %vm183_vm2, %v1063_v7, 0.0 }
 0x72a   :  { %v1955_v6 = vpop.f32.mrf.mxu0 }
 0x72b   :  { %v1069_v8 = vsel %vm183_vm2, %v1061_v5, 0.0  ;;  %v1064_v12 = vmul.f32 %v1955_v6, %v1765_v3  ;;  %v1054_v32 = vpack.c.bf16 %v1955_v6, %v1954_v2 }
 0x72c   :  { %1070 = vadd.xlane.f32.xlu0 %v1069_v8  ;;  %v1025_v9 = vpop.f32.mrf.mxu0 }
 0x72d   :  { %v1062_v10 = vmul.f32 %v1765_v3, %v1025_v9  ;;  %v1078_v23 = vsel %vm183_vm2, %v1064_v12, 0.0  ;;  %v1053_v34 = vpack.c.bf16 %v1025_v9, %v1022_v4  ;;  %v1101_v36 = vsel %vm183_vm2, %v1054_v32, 0 }
 0x72e   :  { %v1958_v11 = vpop.f32.mrf.mxu0 }
 0x72f   :  { %v1072_v17 = vsel %vm183_vm2, %v1062_v10, 0.0  ;;  %v1067_v21 = vmul.f32 %v1958_v11, %v1765_v3  ;;  %v1098_v37 = vsel %vm183_vm2, %v1053_v34, 0 }
 0x730   :  { %1076 = vadd.xlane.f32.xlu0 %v1075_v14  ;;  %1073 = vadd.xlane.f32.xlu1 %v1072_v17  ;;  %v1038_v18 = vpop.f32.mrf.mxu0 }
 0x731   :  { %v1065_v19 = vmul.f32 %v1765_v3, %v1038_v18  ;;  %v1087_v30 = vsel %vm183_vm2, %v1067_v21, 0.0 }
 0x732   :  { %v1959_v20 = vpop.f32.mrf.mxu0 }
 0x733   :  { %v1056_v22 = vpack.c.bf16 %v1959_v20, %v1958_v11  ;;  %v1081_v24 = vsel %vm183_vm2, %v1065_v19, 0.0  ;;  %v1068_v29 = vmul.f32 %v1959_v20, %v1765_v3 }
 0x734   :  { %1079 = vadd.xlane.f32.xlu1 %v1078_v23  ;;  %1082 = vadd.xlane.f32.xlu0 %v1081_v24  ;;  %v1041_v25 = vpop.f32.mrf.mxu0 }
 0x735   :  { %v1055_v26 = vpack.c.bf16 %v1041_v25, %v1038_v18  ;;  %v1066_v27 = vmul.f32 %v1765_v3, %v1041_v25  ;;  %1972 = vmatprep.subr.bf16.mxu0 %v1056_v22  ;;  %v1107_v28 = vsel %vm183_vm2, %v1056_v22, 0  ;;  %v1090_v33 = vsel %vm183_vm2, %v1068_v29, 0.0 }
 0x736   :  { %1961 = vmatpush3.bf16.xpose.msra.mxu1 %v1107_v28  ;;  %1973 = vmatpush3.bf16.msra.mxu0 %v1056_v22 }
 0x737   :  { %1974 = vmatprep.subr.bf16.mxu0 %v1055_v26  ;;  %v1084_v31 = vsel %vm183_vm2, %v1066_v27, 0.0  ;;  %1962 = vmatprep.subr.bf16.mxu1 %v2137_v13  ;;  %v1104_v35 = vsel %vm183_vm2, %v1055_v26, 0 }
 0x738   :  { %1088 = vadd.xlane.f32.xlu0 %v1087_v30  ;;  %1085 = vadd.xlane.f32.xlu1 %v1084_v31 }
 0x73a   :  { %1975 = vmatpush3.bf16.msra.mxu0 %v1055_v26 }
 0x73b   :  { %1976 = vmatprep.subr.bf16.mxu0 %v1054_v32 }
 0x73c   :  { %1091 = vadd.xlane.f32.xlu1 %v1090_v33 }
 0x73e   :  { %1963 = vmatpush3.bf16.xpose.msra.mxu1 %v1104_v35  ;;  %1977 = vmatpush3.bf16.msra.mxu0 %v1054_v32 }
 0x73f   :  { %1978 = vmatprep.subr.bf16.mxu0 %v1053_v34  ;;  %1964 = vmatprep.subr.bf16.mxu1 %v2137_v13 }
 0x742   :  { %1979 = vmatpush3.bf16.msra.mxu0 %v1053_v34 }
 0x746   :  { %1965 = vmatpush3.bf16.xpose.msra.mxu1 %v1101_v36 }
 0x747   :  { %1966 = vmatprep.subr.bf16.mxu1 %v2137_v13 }
 0x74e   :  { %1967 = vmatpush3.bf16.xpose.msra.mxu1 %v1098_v37 }
 0x755   :  { %1969 = vmatmul.mubr.msk.bf16.vlgmr.msra.gmra.mxu1 %vm183_vm2, %v1093_v41 }
 0x7b5   :  { %v1071_v43 = vpop.xlane.xlu0 %1070 }
 0x7b9   :  { %v1074_v42 = vpop.xlane.xlu1 %1073  ;;  %v1077_v46 = vpop.xlane.xlu0 %1076 }
 0x7bd   :  { %v1080_v45 = vpop.xlane.xlu1 %1079  ;;  %v1083_v48 = vpop.xlane.xlu0 %1082 }
 0x7c1   :  { %v1086_v47 = vpop.xlane.xlu1 %1085  ;;  %v1089_v60 = vpop.xlane.xlu0 %1088 }
 0x7c5   :  { %v1092_v56 = vpop.xlane.xlu1 %1091 }
 0x815   :  { %v1143_v49 = vpop.f32.mrf.mxu1 }
 0x816   :  { %v1152_v50 = vrot.slane %v1143_v49, %v2255_v0 }
 0x817   :  { %v1970_v13 = vpop.f32.mrf.mxu1 }
 0x818   :  { %v1154_v51 = vadd.f32 %v1152_v50, %v1074_v42  ;;  %v1153_v52 = vadd.f32 %v1152_v50, %v1071_v43  ;;  %v1156_v53 = vadd.f32 %v1152_v50, %v1080_v45  ;;  %v1155_v55 = vadd.f32 %v1152_v50, %v1077_v46 }
 0x819   :  { %v1146_v57 = vpop.f32.mrf.mxu1  ;;  %v1158_v58 = vadd.f32 %v1152_v50, %v1086_v47  ;;  %v1157_v59 = vadd.f32 %v1152_v50, %v1083_v48  ;;  %v1160_v3 = vadd.f32 %v1152_v50, %v1092_v56  ;;  %v1159_v8 = vadd.f32 %v1152_v50, %v1089_v60 }
 0x81a   :  { %v1162_v63 = vmul.f32 0.2, %v1154_v51  ;;  %v1161_v1 = vmul.f32 0.2, %v1153_v52  ;;  %v1164_v2 = vmul.f32 0.2, %v1156_v53 }
 0x81b   :  { %v1971_v4 = vpop.f32.mrf.mxu1  ;;  %v1163_v5 = vmul.f32 0.2, %v1155_v55  ;;  %v1166_v6 = vmul.f32 0.2, %v1158_v58  ;;  %v1165_v7 = vmul.f32 0.2, %v1157_v59 }
 0x81c   :  { %v1170_v0 = vmax.f32 %v1154_v51, %v1162_v63  ;;  %v1169_v9 = vmax.f32 %v1153_v52, %v1161_v1  ;;  %v1172_v10 = vmax.f32 %v1156_v53, %v1164_v2  ;;  %v1168_v19 = vmul.f32 0.2, %v1160_v3 }
 0x81d   :  { %v1171_v11 = vmax.f32 %v1155_v55, %v1163_v5  ;;  %v1174_v17 = vmax.f32 %v1158_v58, %v1166_v6  ;;  %v1173_v18 = vmax.f32 %v1157_v59, %v1165_v7  ;;  %v1167_v20 = vmul.f32 0.2, %v1159_v8 }
 0x81e   :  { %v1178_v12 = vadd.f32 %v1170_v0, %v2258_v15  ;;  %v1177_v14 = vadd.f32 %v1169_v9, %v2260_v16  ;;  %v1180_v23 = vadd.f32 %v1172_v10, %v2263_v38  ;;  %v1176_v26 = vmax.f32 %v1160_v3, %v1168_v19 }
 0x81f   :  { %v1179_v24 = vadd.f32 %v1171_v11, %v2266_v40  ;;  %v1182_v25 = vadd.f32 %v1174_v17, %v2271_v44  ;;  %v1181_v27 = vadd.f32 %v1173_v18, %v2277_v54  ;;  %v1175_v28 = vmax.f32 %v1159_v8, %v1167_v20  ;;  %v2034_v17 = vld [vmem:[%s2528_s6 + $0x8] sm:$0xff]   ;;  %v2035_v18 = vld [vmem:[%s2528_s6] sm:$0xff]  }
 0x820   :  { %v1188_v21 = vsel %vm300_vm8, %v1178_v12, -inf  ;;  %v1185_v22 = vsel %vm300_vm8, %v1177_v14, -inf  ;;  %v1194_v15 = vsel %vm300_vm8, %v1180_v23, -inf  ;;  %v1184_v40 = vadd.f32 %v1176_v26, %v2283_v61  ;;  %1988 = vmatprep.subr.bf16.mxu0 %v2034_v17 }
 0x821   :  { %1189 = vmax.xlane.f32.xlu1 %v1188_v21  ;;  %1186 = vmax.xlane.f32.xlu0 %v1185_v22  ;;  %v1191_v16 = vsel %vm300_vm8, %v1179_v24, -inf  ;;  %v1200_v29 = vsel %vm300_vm8, %v1182_v25, -inf  ;;  %v1197_v38 = vsel %vm300_vm8, %v1181_v27, -inf  ;;  %v1183_v30 = vadd.f32 %v1175_v28, %v2285_v62 }
 0x822   :  { %v1206_v44 = vsel %vm300_vm8, %v1184_v40, -inf }
 0x823   :  { %v1203_v31 = vsel %vm300_vm8, %v1183_v30, -inf }
 0x825   :  { %1195 = vmax.xlane.f32.xlu1 %v1194_v15  ;;  %1192 = vmax.xlane.f32.xlu0 %v1191_v16 }
 0x829   :  { %1201 = vmax.xlane.f32.xlu1 %v1200_v29  ;;  %1198 = vmax.xlane.f32.xlu0 %v1197_v38 }
 0x82d   :  { %1207 = vmax.xlane.f32.xlu1 %v1206_v44  ;;  %1204 = vmax.xlane.f32.xlu0 %v1203_v31 }
 0x8aa   :  { %v1190_v54 = vpop.xlane.xlu1 %1189  ;;  %v1187_v32 = vpop.xlane.xlu0 %1186 }
 0x8ab   :  { %v1210_v33 = vsub.f32 %v1178_v12, %v1190_v54  ;;  %v1209_v34 = vsub.f32 %v1177_v14, %v1187_v32 }
 0x8ad   :  { %v1219_v35 = vmul.f32 1.442695, %v1210_v33  ;;  %v1217_v36 = vmul.f32 1.442695, %v1209_v34 }
 0x8ae   :  { %v1196_v37 = vpop.xlane.xlu1 %1195  ;;  %v1193_v39 = vpop.xlane.xlu0 %1192 }
 0x8af   :  { %2105 = vpow2.f32 %v1219_v35  ;;  %v1212_v61 = vsub.f32 %v1180_v23, %v1196_v37  ;;  %v1211_v41 = vsub.f32 %v1179_v24, %v1193_v39 }
 0x8b0   :  { %2107 = vpow2.f32 %v1217_v36 }
 0x8b1   :  { %v1223_v62 = vmul.f32 1.442695, %v1212_v61  ;;  %v1221_v42 = vmul.f32 1.442695, %v1211_v41 }
 0x8b2   :  { %v1202_v43 = vpop.xlane.xlu1 %1201  ;;  %v1199_v45 = vpop.xlane.xlu0 %1198 }
 0x8b3   :  { %2109 = vpow2.f32 %v1223_v62  ;;  %v1214_v46 = vsub.f32 %v1182_v25, %v1202_v43  ;;  %v1213_v47 = vsub.f32 %v1181_v27, %v1199_v45 }
 0x8b4   :  { %2111 = vpow2.f32 %v1221_v42 }
 0x8b5   :  { %v1227_v48 = vmul.f32 1.442695, %v1214_v46  ;;  %v1225_v49 = vmul.f32 1.442695, %v1213_v47 }
 0x8b6   :  { %v1208_v50 = vpop.xlane.xlu1 %1207  ;;  %v1205_v13 = vpop.xlane.xlu0 %1204 }
 0x8b7   :  { %2113 = vpow2.f32 %v1227_v48  ;;  %v1216_v51 = vsub.f32 %v1184_v40, %v1208_v50  ;;  %v1215_v52 = vsub.f32 %v1183_v30, %v1205_v13 }
 0x8b8   :  { %2115 = vpow2.f32 %v1225_v49 }
 0x8b9   :  { %v1231_v53 = vmul.f32 1.442695, %v1216_v51  ;;  %v1229_v55 = vmul.f32 1.442695, %v1215_v52 }
 0x8bb   :  { %2117 = vpow2.f32 %v1231_v53 }
 0x8bc   :  { %v2106_v56 = vpop.eup %2105  ;;  %2119 = vpow2.f32 %v1229_v55 }
 0x8bd   :  { %v2108_v57 = vpop.eup %2107  ;;  %v1236_v58 = vsel %vm300_vm8, %v2106_v56, 0.0 }
 0x8be   :  { %1237 = vadd.xlane.f32.xlu1 %v1236_v58  ;;  %v1233_v59 = vsel %vm300_vm8, %v2108_v57, 0.0  ;;  %v1265_v60 = vpack.c.bf16 %v2106_v56, %v2108_v57  ;;  %v2036_v58 = vld [vmem:[%s2529_s7 + $0x10] sm:$0xff]  }
 0x8bf   :  { %1234 = vadd.xlane.f32.xlu0 %v1233_v59  ;;  %2000 = vmatprep.subr.bf16.mxu1 %v2036_v58  ;;  %v2037_v59 = vld [vmem:[%s2529_s7 + $0x8] sm:$0xff]  }
 0x8c0   :  { %v2110_v63 = vpop.eup %2109  ;;  %1980 = vmatprep.mubr.msk.bf16.mxu0 %vm300_vm8, %v1265_v60  ;;  %2001 = vmatpush3.bf16.msra.mxu1 %v2036_v58  ;;  %v2038_v60 = vld [vmem:[%s2529_s7] sm:$0xff]  }
 0x8c1   :  { %v2112_v1 = vpop.eup %2111  ;;  %v1242_v2 = vsel %vm300_vm8, %v2110_v63, 0.0  ;;  %2002 = vmatprep.subr.bf16.mxu1 %v2037_v59 }
 0x8c2   :  { %v1266_v3 = vpack.c.bf16 %v2110_v63, %v2112_v1  ;;  %1243 = vadd.xlane.f32.xlu1 %v1242_v2  ;;  %v1239_v4 = vsel %vm300_vm8, %v2112_v1, 0.0  ;;  %v2039_v63 = vld [vmem:[%s2530_s8 + $0x8] sm:$0xff]  }
 0x8c3   :  { %1240 = vadd.xlane.f32.xlu0 %v1239_v4  ;;  %v1771_v1 = vld [vmem:[%s2524_s5 + $0xc] ss:$0 sm:$0xff] }
 0x8c4   :  { %v2114_v5 = vpop.eup %2113  ;;  %1981 = vmatmul.mubr.msk.bf16.vlgmr.msra.gmra.mxu0 %vm300_vm8, %v1266_v3  ;;  %2003 = vmatpush3.bf16.msra.mxu1 %v2037_v59 }
 0x8c5   :  { %v2116_v6 = vpop.eup %2115  ;;  %v1248_v7 = vsel %vm300_vm8, %v2114_v5, 0.0  ;;  %1989 = vmatpush3.bf16.msra.mxu0 %v2034_v17  ;;  %2004 = vmatprep.subr.bf16.mxu1 %v2038_v60 }
 0x8c6   :  { %1249 = vadd.xlane.f32.xlu1 %v1248_v7  ;;  %v1245_v8 = vsel %vm300_vm8, %v2116_v6, 0.0  ;;  %v1267_v0 = vpack.c.bf16 %v2114_v5, %v2116_v6  ;;  %1990 = vmatprep.subr.bf16.mxu0 %v2035_v18  ;;  %v1778_v5 = vld [vmem:[%s2524_s5 + $0xa] ss:$0 sm:$0xff] }
 0x8c7   :  { %1246 = vadd.xlane.f32.xlu0 %v1245_v8 }
 0x8c8   :  { %v2118_v9 = vpop.eup %2117  ;;  %1984 = vmatprep.mubr.msk.bf16.mxu0 %vm300_vm8, %v1267_v0  ;;  %2005 = vmatpush3.bf16.msra.mxu1 %v2038_v60 }
 0x8c9   :  { %v2120_v10 = vpop.eup %2119  ;;  %v1254_v11 = vsel %vm300_vm8, %v2118_v9, 0.0  ;;  %1991 = vmatpush3.bf16.msra.mxu0 %v2035_v18 }
 0x8ca   :  { %1255 = vadd.xlane.f32.xlu1 %v1254_v11  ;;  %v1251_v12 = vsel %vm300_vm8, %v2120_v10, 0.0  ;;  %v1268_v14 = vpack.c.bf16 %v2118_v9, %v2120_v10  ;;  %2014 = vmatprep.subr.bf16.mxu0 %v2039_v63  ;;  %v1779_v11 = vld [vmem:[%s2524_s5 + $0xb] ss:$0 sm:$0xff] }
 0x8cb   :  { %1252 = vadd.xlane.f32.xlu0 %v1251_v12 }
 0x8cc   :  { %1985 = vmatmul.mubr.msk.bf16.gmra.mxu0 %vm300_vm8, %v1268_v14 }
 0x947   :  { %v1238_v19 = vpop.xlane.xlu1 %1237 }
 0x948   :  { %v1235_v20 = vpop.xlane.xlu0 %1234  ;;  %v1258_v23 = vmax.f32 %v1238_v19, 1e-30 }
 0x949   :  { %v1257_v26 = vmax.f32 %v1235_v20, 1e-30 }
 0x94a   :  { %2121 = vrcp.f32 %v1258_v23 }
 0x94b   :  { %v1244_v21 = vpop.xlane.xlu1 %1243 }
 0x94c   :  { %v1241_v22 = vpop.xlane.xlu0 %1240  ;;  %v1260_v25 = vmax.f32 %v1244_v21, 1e-30 }
 0x94d   :  { %v1259_v16 = vmax.f32 %v1241_v22, 1e-30 }
 0x94e   :  { %2123 = vrcp.f32 %v1260_v25 }
 0x94f   :  { %v1250_v24 = vpop.xlane.xlu1 %1249  ;;  %2125 = vrcp.f32 %v1257_v26 }
 0x950   :  { %v1247_v15 = vpop.xlane.xlu0 %1246  ;;  %2127 = vrcp.f32 %v1259_v16  ;;  %v1262_v28 = vmax.f32 %v1250_v24, 1e-30 }
 0x951   :  { %v1261_v40 = vmax.f32 %v1247_v15, 1e-30 }
 0x952   :  { %2129 = vrcp.f32 %v1262_v28 }
 0x953   :  { %v1256_v27 = vpop.xlane.xlu1 %1255 }
 0x954   :  { %v1253_v29 = vpop.xlane.xlu0 %1252  ;;  %v1264_v38 = vmax.f32 %v1256_v27, 1e-30 }
 0x955   :  { %v1263_v30 = vmax.f32 %v1253_v29, 1e-30 }
 0x956   :  { %2131 = vrcp.f32 %v1264_v38 }
 0x957   :  { %2133 = vrcp.f32 %v1261_v40  ;;  %v2122_v54 = vpop.eup %2121 }
 0x958   :  { %2135 = vrcp.f32 %v1263_v30 }
 0x95b   :  { %v2124_v33 = vpop.eup %2123 }
 0x95c   :  { %v2126_v34 = vpop.eup %2125 }
 0x95d   :  { %v2128_v37 = vpop.eup %2127 }
 0x95f   :  { %v2130_v46 = vpop.eup %2129 }
 0x963   :  { %v2132_v48 = vpop.eup %2131 }
 0x964   :  { %v2134_v49 = vpop.eup %2133 }
 0x965   :  { %v2136_v51 = vpop.eup %2135 }
 0x984   :  { %v1982_v44 = vpop.f32.mrf.mxu0 }
 0x985   :  { %v1356_v41 = vmul.f32 %v2128_v37, %v1982_v44 }
 0x986   :  { %v1315_v31 = vpop.f32.mrf.mxu0 }
 0x987   :  { %v1354_v39 = vmul.f32 %v2126_v34, %v1315_v31 }
 0x988   :  { %v1983_v32 = vpop.f32.mrf.mxu0 }
 0x989   :  { %v1357_v35 = vmul.f32 %v2124_v33, %v1983_v32 }
 0x98a   :  { %v1318_v36 = vpop.f32.mrf.mxu0 }
 0x98b   :  { %v1355_v61 = vmul.f32 %v2122_v54, %v1318_v36  ;;  %v1367_v43 = vpack.c.bf16 %v1357_v35, %v1356_v41 }
 0x98c   :  { %v1986_v62 = vpop.f32.mrf.mxu0 }
 0x98d   :  { %v1366_v42 = vpack.c.bf16 %v1355_v61, %v1354_v39  ;;  %v1360_v55 = vmul.f32 %v2136_v51, %v1986_v62 }
 0x98e   :  { %v1331_v45 = vpop.f32.mrf.mxu0 }
 0x98f   :  { %1992 = vmatprep.mubr.msk.bf16.mxu0 %vm183_vm2, %v1366_v42  ;;  %v1358_v52 = vmul.f32 %v2134_v49, %v1331_v45  ;;  %v2040_v45 = vld [vmem:[%s2530_s8] sm:$0xff]  }
 0x990   :  { %v1987_v47 = vpop.f32.mrf.mxu0  ;;  %1993 = vmatmul.mubr.msk.bf16.vlgmr.msra.gmra.mxu0 %vm183_vm2, %v1367_v43 }
 0x991   :  { %v1361_v50 = vmul.f32 %v2132_v48, %v1987_v47  ;;  %2015 = vmatpush3.bf16.msra.mxu0 %v2039_v63  ;;  %v1780_v48 = vld [vmem:[%s2524_s5 + $0xd] ss:$0 sm:$0xff] }
 0x992   :  { %v1334_v13 = vpop.f32.mrf.mxu0  ;;  %2016 = vmatprep.subr.bf16.mxu0 %v2040_v45 }
 0x993   :  { %v1359_v53 = vmul.f32 %v2130_v46, %v1334_v13  ;;  %v1369_v57 = vpack.c.bf16 %v1361_v50, %v1360_v55 }
 0x995   :  { %v1368_v56 = vpack.c.bf16 %v1359_v53, %v1358_v52  ;;  %2017 = vmatpush3.bf16.msra.mxu0 %v2040_v45 }
 0x997   :  { %1996 = vmatprep.mubr.msk.bf16.mxu0 %vm183_vm2, %v1368_v56 }
 0x998   :  { %1997 = vmatmul.mubr.msk.bf16.gmra.mxu0 %vm183_vm2, %v1369_v57 }
 0xa50   :  { %v1994_v2 = vpop.f32.mrf.mxu0 }
 0xa51   :  { %v1442_v3 = vadd.f32 %v1994_v2, %v1771_v1 }
 0xa52   :  { %v1433_v4 = vpop.f32.mrf.mxu0 }
 0xa53   :  { %v1434_v6 = vadd.f32 %v1771_v1, %v1433_v4  ;;  %v1472_v9 = vmul.f32 %v1778_v5, %v1442_v3 }
 0xa54   :  { %v1995_v7 = vpop.f32.mrf.mxu0 }
 0xa55   :  { %v1470_v8 = vmul.f32 %v1778_v5, %v1434_v6  ;;  %v1445_v0 = vadd.f32 %v1995_v7, %v1771_v1  ;;  %v1484_v21 = vadd.f32 %v1779_v11, %v1472_v9 }
 0xa56   :  { %v1436_v10 = vpop.f32.mrf.mxu0 }
 0xa57   :  { %v1473_v12 = vmul.f32 %v1778_v5, %v1445_v0  ;;  %v1437_v14 = vadd.f32 %v1771_v1, %v1436_v10  ;;  %v1482_v18 = vadd.f32 %v1779_v11, %v1470_v8  ;;  %v1492_v29 = vmax.f32 %v1484_v21, 0.0 }
 0xa58   :  { %v1998_v17 = vpop.f32.mrf.mxu0 }
 0xa59   :  { %v1485_v19 = vadd.f32 %v1779_v11, %v1473_v12  ;;  %v1471_v20 = vmul.f32 %v1778_v5, %v1437_v14  ;;  %v1458_v22 = vadd.f32 %v1998_v17, %v1771_v1  ;;  %v1490_v16 = vmax.f32 %v1482_v18, 0.0  ;;  %v1788_v14 = vld [vmem:[%s2524_s5 + $0xe] ss:$0 sm:$0xff] }
 0xa5a   :  { %v1449_v23 = vpop.f32.mrf.mxu0 }
 0xa5b   :  { %v1483_v24 = vadd.f32 %v1779_v11, %v1471_v20  ;;  %v1450_v25 = vadd.f32 %v1771_v1, %v1449_v23  ;;  %v1493_v26 = vmax.f32 %v1485_v19, 0.0  ;;  %v1476_v38 = vmul.f32 %v1778_v5, %v1458_v22 }
 0xa5c   :  { %v1999_v15 = vpop.f32.mrf.mxu0 }
 0xa5d   :  { %v1491_v27 = vmax.f32 %v1483_v24, 0.0  ;;  %v1474_v28 = vmul.f32 %v1778_v5, %v1450_v25  ;;  %v1461_v40 = vadd.f32 %v1999_v15, %v1771_v1  ;;  %v1505_v54 = vpack.c.bf16 %v1493_v26, %v1492_v29 }
 0xa5e   :  { %v1452_v30 = vpop.f32.mrf.mxu0  ;;  %v1488_v35 = vadd.f32 %v1779_v11, %v1476_v38 }
 0xa5f   :  { %v1504_v44 = vpack.c.bf16 %v1491_v27, %v1490_v16  ;;  %v1453_v31 = vadd.f32 %v1771_v1, %v1452_v30  ;;  %v1477_v32 = vmul.f32 %v1778_v5, %v1461_v40  ;;  %v1486_v33 = vadd.f32 %v1779_v11, %v1474_v28 }
 0xa60   :  { %v1496_v62 = vmax.f32 %v1488_v35, 0.0 }
 0xa61   :  { %v1475_v34 = vmul.f32 %v1778_v5, %v1453_v31  ;;  %2006 = vmatprep.mubr.msk.bf16.mxu1 %vm1531_vm12, %v1504_v44  ;;  %v1489_v36 = vadd.f32 %v1779_v11, %v1477_v32  ;;  %v1494_v61 = vmax.f32 %v1486_v33, 0.0 }
 0xa62   :  { %2007 = vmatmul.mubr.msk.bf16.vlgmr.msra.gmra.mxu1 %vm1531_vm12, %v1505_v54 }
 0xa63   :  { %v1487_v37 = vadd.f32 %v1779_v11, %v1475_v34  ;;  %v1497_v39 = vmax.f32 %v1489_v36, 0.0 }
 0xa65   :  { %v1495_v41 = vmax.f32 %v1487_v37, 0.0  ;;  %v1507_v43 = vpack.c.bf16 %v1497_v39, %v1496_v62 }
 0xa67   :  { %v1506_v42 = vpack.c.bf16 %v1495_v41, %v1494_v61 }
 0xa69   :  { %2010 = vmatprep.mubr.msk.bf16.mxu1 %vm1531_vm12, %v1506_v42 }
 0xa6a   :  { %2011 = vmatmul.mubr.msk.bf16.gmra.mxu1 %vm1531_vm12, %v1507_v43 }
 0xb22   :  { %v2008_v46 = vpop.f32.mrf.mxu1 }
 0xb23   :  { %v1587_v51 = vadd.f32 %v2008_v46, %v1780_v48 }
 0xb24   :  { %v1578_v47 = vpop.f32.mrf.mxu1 }
 0xb25   :  { %v1579_v50 = vadd.f32 %v1780_v48, %v1578_v47  ;;  %v1611_v59 = vmax.f32 %v1587_v51, 0.0 }
 0xb26   :  { %v2009_v49 = vpop.f32.mrf.mxu1 }
 0xb27   :  { %v1590_v13 = vadd.f32 %v2009_v49, %v1780_v48  ;;  %v1609_v57 = vmax.f32 %v1579_v50, 0.0 }
 0xb28   :  { %v1581_v52 = vpop.f32.mrf.mxu1 }
 0xb29   :  { %v1582_v53 = vadd.f32 %v1780_v48, %v1581_v52  ;;  %v1612_v55 = vmax.f32 %v1590_v13, 0.0 }
 0xb2a   :  { %v2012_v56 = vpop.f32.mrf.mxu1 }
 0xb2b   :  { %v1610_v58 = vmax.f32 %v1582_v53, 0.0  ;;  %v1622_v1 = vpack.c.bf16 %v1612_v55, %v1611_v59  ;;  %v1603_v5 = vadd.f32 %v2012_v56, %v1780_v48 }
 0xb2c   :  { %v1594_v60 = vpop.f32.mrf.mxu1 }
 0xb2d   :  { %v1621_v63 = vpack.c.bf16 %v1610_v58, %v1609_v57  ;;  %v1595_v3 = vadd.f32 %v1780_v48, %v1594_v60  ;;  %v1615_v10 = vmax.f32 %v1603_v5, 0.0 }
 0xb2e   :  { %v2013_v2 = vpop.f32.mrf.mxu1 }
 0xb2f   :  { %v1606_v4 = vadd.f32 %v2013_v2, %v1780_v48  ;;  %2018 = vmatprep.mubr.msk.bf16.mxu0 %vm183_vm2, %v1621_v63  ;;  %v1613_v0 = vmax.f32 %v1595_v3, 0.0 }
 0xb30   :  { %v1597_v6 = vpop.f32.mrf.mxu1  ;;  %2019 = vmatmul.mubr.msk.bf16.vlgmr.msra.gmra.mxu0 %vm183_vm2, %v1622_v1 }
 0xb31   :  { %v1598_v7 = vadd.f32 %v1780_v48, %v1597_v6  ;;  %v1616_v8 = vmax.f32 %v1606_v4, 0.0 }
 0xb33   :  { %v1614_v9 = vmax.f32 %v1598_v7, 0.0  ;;  %v1624_v12 = vpack.c.bf16 %v1616_v8, %v1615_v10 }
 0xb35   :  { %v1623_v11 = vpack.c.bf16 %v1614_v9, %v1613_v0 }
 0xb37   :  { %2022 = vmatprep.mubr.msk.bf16.mxu0 %vm183_vm2, %v1623_v11 }
 0xb38   :  { %2023 = vmatmul.mubr.msk.bf16.gmra.mxu0 %vm183_vm2, %v1624_v12 }
 0xbf0   :  { %v2020_v17 = vpop.f32.mrf.mxu0 }
 0xbf1   :  { %v1697_v18 = vadd.f32 %v2020_v17, %v1788_v14 }
 0xbf2   :  { %v1688_v19 = vpop.f32.mrf.mxu0 }
 0xbf3   :  { %1722 = vst.msk [vmem:[%s2531_s9 + $0x10] sm:$0xff] %vm1719_vm13, %v1697_v18  ;;  %v1689_v20 = vadd.f32 %v1788_v14, %v1688_v19 }
 0xbf4   :  { %v2021_v21 = vpop.f32.mrf.mxu0 }
 0xbf5   :  { %1720 = vst.msk [vmem:[%s2531_s9] sm:$0xff] %vm1719_vm13, %v1689_v20  ;;  %v1700_v22 = vadd.f32 %v2021_v21, %v1788_v14 }
 0xbf6   :  { %v1691_v23 = vpop.f32.mrf.mxu0 }
 0xbf7   :  { %1723 = vst.msk [vmem:[%s2531_s9 + $0x18] sm:$0xff] %vm1719_vm13, %v1700_v22  ;;  %v1692_v24 = vadd.f32 %v1788_v14, %v1691_v23 }
 0xbf8   :  { %v2024_v25 = vpop.f32.mrf.mxu0 }
 0xbf9   :  { %1721 = vst.msk [vmem:[%s2531_s9 + $0x8] sm:$0xff] %vm1719_vm13, %v1692_v24  ;;  %v1713_v26 = vadd.f32 %v2024_v25, %v1788_v14 }
 0xbfa   :  { %v1704_v15 = vpop.f32.mrf.mxu0 }
 0xbfb   :  { %1726 = vst.msk [vmem:[%s2531_s9 + $0x30] sm:$0xff] %vm1719_vm13, %v1713_v26  ;;  %v1705_v16 = vadd.f32 %v1788_v14, %v1704_v15 }
 0xbfc   :  { %v2025_v27 = vpop.f32.mrf.mxu0 }
 0xbfd   :  { %1724 = vst.msk [vmem:[%s2531_s9 + $0x20] sm:$0xff] %vm1719_vm13, %v1705_v16  ;;  %v1716_v28 = vadd.f32 %v2025_v27, %v1788_v14 }
 0xbfe   :  { %v1707_v29 = vpop.f32.mrf.mxu0 }
 0xbff   :  { %1727 = vst.msk [vmem:[%s2531_s9 + $0x38] sm:$0xff] %vm1719_vm13, %v1716_v28  ;;  %v1708_v38 = vadd.f32 %v1788_v14, %v1707_v29 }
 0xc01   :  { %1725 = vst.msk [vmem:[%s2531_s9 + $0x28] sm:$0xff] %vm1719_vm13, %v1708_v38 }

</bundles_post_ra>
